<compile_context>
chip_gen: v7x
topology: tpu7x:2x2x1
jax: 0.10.0
libtpu: 0.0.40
codegen_flags: <defaults>
</compile_context>

<pallas_src>
import math

import jax
import jax.numpy as jnp
from jax.experimental import pallas as pl
from jax.experimental.pallas import tpu as pltpu

HIDDEN = 32
NUM_LAYERS = 2
LANE = 128               # vreg lane width; layer-1 block starts here in the fused RHS
RHS_COLS = 2 * LANE      # fused recurrent RHS columns (layer-0 block | layer-1 block)


def gru_fc_kernel(x_ref,            # (T, B, 1)  time-major input, f32
                  w0x_ref,          # (1, 3H)    weight_ih_l0^T, f32
                  b0x_ref,          # (1, 3H)    bias_ih_l0, f32
                  rhs_ref,          # (2H, 256)  fused skewed recurrent weight, bf16
                  bh_ref,           # (1, 256)   fused post-matmul bias, f32
                  wfc_ref,          # (1, H)     fc.weight, f32
                  bfc_ref,          # (1, 1)     fc.bias, f32
                  out_ref):         # (B, 1)
    T, B, _ = x_ref.shape
    H = wfc_ref.shape[1]
    H2, H3 = 2 * H, 3 * H
    L1 = LANE  # lane offset of the layer-1 gate block in the fused matmul output

    rhs = rhs_ref[...]     # resident across the unrolled loop (bf16, ~32 KB)
    bh = bh_ref[...]

    # Hoisted layer-0 input projection: input feature size is 1, so the K=1 "matmul"
    # collapses to a broadcast multiply done once, off the recurrent chain.
    gi0_all = x_ref[...] * w0x_ref[...] + b0x_ref[...]            # (T, B, 3H) f32

    def sigmoid(v):
        # Single EUP op (tanh) instead of exp + divide.
        return 0.5 * jnp.tanh(0.5 * v) + 0.5

    h0 = jnp.zeros((B, H), jnp.float32)   # holds h0_{s-1}
    h1 = jnp.zeros((B, H), jnp.float32)   # holds h1_{s-2}

    # Skewed (lagged) schedule, fully unrolled: super-step s computes layer-0 time
    # step s and layer-1 time step s-1 from a single fused MXU push.
    for s in range(T + 1):
        lhs = jnp.concatenate([h0, h1], axis=-1).astype(jnp.bfloat16)   # (B, 2H)
        # One bf16 MXU push, f32 accumulate.  Output lanes (after +bh):
        #   [0, 3H)        : h0_{s-1} @ Whh0^T + bhh0                    (layer-0 gh)
        #   [L1, L1+2H)    : gi1_rz + gh1_rz + biases   (layer-1 r/z, already summed)
        #   [L1+2H, L1+3H) : h0_{s-1} @ Wih1^T_n + bih1_n                (layer-1 gi_n)
        #   [L1+3H, L1+4H) : h1_{s-2} @ Whh1^T_n + bhh1_n                (layer-1 gh_n)
        g = jnp.dot(lhs, rhs, preferred_element_type=jnp.float32) + bh  # (B, 256) f32

        if s >= 1:
            # Layer-1 cell for time step s-1 (input h0_{s-1}, hidden h1_{s-2}).
            r1 = sigmoid(g[:, L1:L1 + H])
            z1 = sigmoid(g[:, L1 + H:L1 + H2])
            n1 = jnp.tanh(g[:, L1 + H2:L1 + H3] + r1 * g[:, L1 + H3:L1 + 4 * H])
            h1_new = n1 + z1 * (h1 - n1)
        if s < T:
            # Layer-0 cell for time step s (PyTorch gate order r, z, n).
            gi0 = gi0_all[s]                                             # static index
            r0 = sigmoid(gi0[:, :H] + g[:, :H])
            z0 = sigmoid(gi0[:, H:H2] + g[:, H:H2])
            n0 = jnp.tanh(gi0[:, H2:H3] + r0 * g[:, H2:H3])
            h0_new = n0 + z0 * (h0 - n0)

        if s >= 1:
            h1 = h1_new        # -> h1_{s-1}
        if s < T:
            h0 = h0_new        # -> h0_{s}

    # fc(out[:, -1, :]) == fc(h1_{T-1}).  N=1 -> VPU multiply + lane reduction instead
    # of a near-empty MXU push.
    out_ref[...] = (jnp.sum(h1 * wfc_ref[...], axis=-1, keepdims=True)
                    + bfc_ref[...])


def prepare_kernel_params(params, hidden=HIDDEN):
    """Pack weights into the kernel's fused layout ONCE (outside the jitted forward).

    Returns (w0x, b0x, rhs_bf16, bh, wfc, bfc).
    """
    (wih0, whh0, bih0, bhh0, wih1, whh1, bih1, bhh1, wfc, bfc) = params
    H = hidden
    H2, H3 = 2 * H, 3 * H
    L1 = LANE

    # Skewed fused recurrent weight, bf16, 128-lane-aligned blocks.
    rhs = jnp.zeros((2 * H, RHS_COLS), jnp.float32)
    rhs = rhs.at[:H, :H3].set(whh0)                        # layer-0 gh       (h0 rows)
    rhs = rhs.at[:H, L1:L1 + H2].set(wih1[:, :H2])         # layer-1 r/z gi   (h0 rows)
    rhs = rhs.at[H:, L1:L1 + H2].set(whh1[:, :H2])         # layer-1 r/z gh   (h1 rows)
    rhs = rhs.at[:H, L1 + H2:L1 + H3].set(wih1[:, H2:])    # layer-1 n  gi    (h0 rows)
    rhs = rhs.at[H:, L1 + H3:L1 + 4 * H].set(whh1[:, H2:]) # layer-1 n  gh    (h1 rows)
    rhs = rhs.astype(jnp.bfloat16)

    # Post-matmul bias laid out to match the fused output columns (kept f32).
    bh = jnp.zeros((1, RHS_COLS), jnp.float32)
    bh = bh.at[:, :H3].set(bhh0)
    bh = bh.at[:, L1:L1 + H2].set(bih1[:, :H2] + bhh1[:, :H2])
    bh = bh.at[:, L1 + H2:L1 + H3].set(bih1[:, H2:])
    bh = bh.at[:, L1 + H3:L1 + 4 * H].set(bhh1[:, H2:])

    return (wih0, bih0, rhs, bh, wfc, bfc)


@jax.jit
def gru_net_forward(x, kparams):
    """x: (B, T, 1) float32 batch-first (like PyTorch). Returns (B, 1)."""
    (w0x, b0x, rhs, bh, wfc, bfc) = kparams
    B, T, _ = x.shape

    x_tm = jnp.transpose(x, (1, 0, 2)).astype(jnp.float32)       # (T, B, 1) time-major

    kernel_inputs = (x_tm, w0x, b0x, rhs, bh, wfc, bfc)
    return pl.pallas_call(
        gru_fc_kernel,
        out_shape=jax.ShapeDtypeStruct((B, 1), jnp.float32),
        in_specs=[pl.BlockSpec(memory_space=pltpu.MemorySpace.VMEM)] * len(kernel_inputs),
        out_specs=pl.BlockSpec(memory_space=pltpu.MemorySpace.VMEM),
    )(*kernel_inputs)


def init_params(key, hidden=HIDDEN):
    """Deterministic init mimicking PyTorch GRU/Linear uniform(-1/sqrt(H), 1/sqrt(H)).
    Recurrent weights stored pre-transposed as (in_features, 3H) with gate order
    [r | z | n]; fc.weight kept in PyTorch (out, in) = (1, H) layout."""
    bound = 1.0 / math.sqrt(hidden)
    ks = jax.random.split(key, 10)
    u = lambda k, shape: jax.random.uniform(k, shape, jnp.float32, -bound, bound)
    return (
        u(ks[0], (1, 3 * hidden)),        # weight_ih_l0^T  (in=1, 3H)
        u(ks[1], (hidden, 3 * hidden)),   # weight_hh_l0^T
        u(ks[2], (1, 3 * hidden)),        # bias_ih_l0
        u(ks[3], (1, 3 * hidden)),        # bias_hh_l0
        u(ks[4], (hidden, 3 * hidden)),   # weight_ih_l1^T  (in=H, 3H)
        u(ks[5], (hidden, 3 * hidden)),   # weight_hh_l1^T
        u(ks[6], (1, 3 * hidden)),        # bias_ih_l1
        u(ks[7], (1, 3 * hidden)),        # bias_hh_l1
        u(ks[8], (1, hidden)),            # fc.weight  (out=1, in=H)
        u(ks[9], (1, 1)),                 # fc.bias
    )


def gru_net_reference(x, params, hidden=HIDDEN):
    """Independent pure-JAX f32 reference of the PyTorch forward (no kernel code)."""
    (wih0, whh0, bih0, bhh0, wih1, whh1, bih1, bhh1, wfc, bfc) = params
    B, T, _ = x.shape
    H = hidden

    def cell(x_t, h, w_ih_t, w_hh_t, b_ih, b_hh):
        gi = x_t @ w_ih_t + b_ih
        gh = h @ w_hh_t + b_hh
        i_r, i_z, i_n = gi[:, :H], gi[:, H:2 * H], gi[:, 2 * H:]
        h_r, h_z, h_n = gh[:, :H], gh[:, H:2 * H], gh[:, 2 * H:]
        r = jax.nn.sigmoid(i_r + h_r)
        z = jax.nn.sigmoid(i_z + h_z)
        n = jnp.tanh(i_n + r * h_n)
        return (1.0 - z) * n + z * h

    h0 = jnp.zeros((B, H), jnp.float32)
    h1 = jnp.zeros((B, H), jnp.float32)
    for t in range(T):
        h0 = cell(x[:, t, :], h0, wih0, whh0, bih0, bhh0)
        h1 = cell(h0, h1, wih1, whh1, bih1, bhh1)
    return h1 @ wfc.T + bfc


if __name__ == "__main__":
    key = jax.random.PRNGKey(0)
    k_x, k_p = jax.random.split(key)

    B, T = 2, 8
    x = jax.random.normal(k_x, (B, T, 1), jnp.float32)   # batch-first, like PyTorch
    params = init_params(k_p)
    kparams = prepare_kernel_params(params)              # packed/bf16 weights built once

    out = jax.block_until_ready(gru_net_forward(x, kparams))
    ref = gru_net_reference(x, params)

    assert out.shape == (B, 1), out.shape
    # bf16 MXU operands (f32 accumulation) -> loosened tolerance vs the f32 reference.
    assert jnp.allclose(out, ref, atol=3e-2, rtol=3e-2), (out, ref)

    print("KERNEL_OK")
</pallas_src>

<mosaic_0001>
module attributes {stable_mosaic.version = 11 : i64} {
  func.func @gru_fc_kernel(%arg0: memref<8x2x1xf32, #tpu.memory_space<vmem>>, %arg1: memref<1x96xf32, #tpu.memory_space<vmem>>, %arg2: memref<1x96xf32, #tpu.memory_space<vmem>>, %arg3: memref<64x256xbf16, #tpu.memory_space<vmem>>, %arg4: memref<1x256xf32, #tpu.memory_space<vmem>>, %arg5: memref<1x32xf32, #tpu.memory_space<vmem>>, %arg6: memref<1x1xf32, #tpu.memory_space<vmem>>, %arg7: memref<2x1xf32, #tpu.memory_space<vmem>>) attributes {dimension_semantics = [], scalar_prefetch = 0 : i64, scratch_operands = 0 : i64, tpu.core_type = #tpu.core_type<tc>} {
    %c0 = arith.constant 0 : index
    %c0_0 = arith.constant 0 : index
    %0 = vector.load %arg3[%c0, %c0_0] : memref<64x256xbf16, #tpu.memory_space<vmem>>, vector<64x256xbf16>
    %c0_1 = arith.constant 0 : index
    %c0_2 = arith.constant 0 : index
    %1 = vector.load %arg4[%c0_1, %c0_2] : memref<1x256xf32, #tpu.memory_space<vmem>>, vector<1x256xf32>
    %c0_3 = arith.constant 0 : index
    %c0_4 = arith.constant 0 : index
    %c0_5 = arith.constant 0 : index
    %2 = vector.load %arg0[%c0_3, %c0_4, %c0_5] : memref<8x2x1xf32, #tpu.memory_space<vmem>>, vector<8x2x1xf32>
    %c0_6 = arith.constant 0 : index
    %c0_7 = arith.constant 0 : index
    %3 = vector.load %arg1[%c0_6, %c0_7] : memref<1x96xf32, #tpu.memory_space<vmem>>, vector<1x96xf32>
    %4 = vector.shape_cast %3 : vector<1x96xf32> to vector<1x1x96xf32>
    %5 = vector.broadcast %2 : vector<8x2x1xf32> to vector<8x2x96xf32>
    %6 = vector.broadcast %4 : vector<1x1x96xf32> to vector<8x2x96xf32>
    %7 = arith.mulf %5, %6 : vector<8x2x96xf32>
    %c0_8 = arith.constant 0 : index
    %c0_9 = arith.constant 0 : index
    %8 = vector.load %arg2[%c0_8, %c0_9] : memref<1x96xf32, #tpu.memory_space<vmem>>, vector<1x96xf32>
    %9 = vector.shape_cast %8 : vector<1x96xf32> to vector<1x1x96xf32>
    %10 = vector.broadcast %9 : vector<1x1x96xf32> to vector<8x2x96xf32>
    %11 = arith.addf %7, %10 : vector<8x2x96xf32>
    %cst = arith.constant 0.000000e+00 : f32
    %12 = vector.broadcast %cst : f32 to vector<2x32xf32>
    %cst_10 = arith.constant 0.000000e+00 : f32
    %13 = vector.broadcast %cst_10 : f32 to vector<2x32xf32>
    %14 = tpu.concatenate %12, %13 in 1 : vector<2x32xf32>, vector<2x32xf32> -> vector<2x64xf32>
    %15 = arith.truncf %14 : vector<2x64xf32> to vector<2x64xbf16>
    %cst_11 = arith.constant dense<0.000000e+00> : vector<2x256xf32>
    %16 = tpu.matmul %15, %0, %cst_11 {dimension_numbers = #tpu.dot_dimension_numbers<[1], [0], [0], [1], [0, 0, 1, 1], [], []>} : vector<2x64xbf16>, vector<64x256xbf16>, vector<2x256xf32> -> vector<2x256xf32>
    %17 = vector.broadcast %1 : vector<1x256xf32> to vector<2x256xf32>
    %18 = arith.addf %16, %17 : vector<2x256xf32>
    %19 = vector.extract_strided_slice %11 {offsets = [0, 0, 0], sizes = [1, 2, 96], strides = [1, 1, 1]} : vector<8x2x96xf32> to vector<1x2x96xf32>
    %20 = vector.shape_cast %19 : vector<1x2x96xf32> to vector<2x96xf32>
    %21 = vector.extract_strided_slice %20 {offsets = [0, 0], sizes = [2, 32], strides = [1, 1]} : vector<2x96xf32> to vector<2x32xf32>
    %22 = vector.extract_strided_slice %18 {offsets = [0, 0], sizes = [2, 32], strides = [1, 1]} : vector<2x256xf32> to vector<2x32xf32>
    %23 = arith.addf %21, %22 : vector<2x32xf32>
    %cst_12 = arith.constant 5.000000e-01 : f32
    %24 = vector.broadcast %cst_12 : f32 to vector<2x32xf32>
    %25 = arith.mulf %24, %23 : vector<2x32xf32>
    %26 = math.tanh %25 : vector<2x32xf32>
    %cst_13 = arith.constant 5.000000e-01 : f32
    %27 = vector.broadcast %cst_13 : f32 to vector<2x32xf32>
    %28 = arith.mulf %27, %26 : vector<2x32xf32>
    %cst_14 = arith.constant 5.000000e-01 : f32
    %29 = vector.broadcast %cst_14 : f32 to vector<2x32xf32>
    %30 = arith.addf %28, %29 : vector<2x32xf32>
    %31 = vector.extract_strided_slice %20 {offsets = [0, 32], sizes = [2, 32], strides = [1, 1]} : vector<2x96xf32> to vector<2x32xf32>
    %32 = vector.extract_strided_slice %18 {offsets = [0, 32], sizes = [2, 32], strides = [1, 1]} : vector<2x256xf32> to vector<2x32xf32>
    %33 = arith.addf %31, %32 : vector<2x32xf32>
    %cst_15 = arith.constant 5.000000e-01 : f32
    %34 = vector.broadcast %cst_15 : f32 to vector<2x32xf32>
    %35 = arith.mulf %34, %33 : vector<2x32xf32>
    %36 = math.tanh %35 : vector<2x32xf32>
    %cst_16 = arith.constant 5.000000e-01 : f32
    %37 = vector.broadcast %cst_16 : f32 to vector<2x32xf32>
    %38 = arith.mulf %37, %36 : vector<2x32xf32>
    %cst_17 = arith.constant 5.000000e-01 : f32
    %39 = vector.broadcast %cst_17 : f32 to vector<2x32xf32>
    %40 = arith.addf %38, %39 : vector<2x32xf32>
    %41 = vector.extract_strided_slice %20 {offsets = [0, 64], sizes = [2, 32], strides = [1, 1]} : vector<2x96xf32> to vector<2x32xf32>
    %42 = vector.extract_strided_slice %18 {offsets = [0, 64], sizes = [2, 32], strides = [1, 1]} : vector<2x256xf32> to vector<2x32xf32>
    %43 = arith.mulf %30, %42 : vector<2x32xf32>
    %44 = arith.addf %41, %43 : vector<2x32xf32>
    %45 = math.tanh %44 : vector<2x32xf32>
    %46 = arith.subf %12, %45 : vector<2x32xf32>
    %47 = arith.mulf %40, %46 : vector<2x32xf32>
    %48 = arith.addf %45, %47 : vector<2x32xf32>
    %49 = tpu.concatenate %48, %13 in 1 : vector<2x32xf32>, vector<2x32xf32> -> vector<2x64xf32>
    %50 = arith.truncf %49 : vector<2x64xf32> to vector<2x64xbf16>
    %cst_18 = arith.constant dense<0.000000e+00> : vector<2x256xf32>
    %51 = tpu.matmul %50, %0, %cst_18 {dimension_numbers = #tpu.dot_dimension_numbers<[1], [0], [0], [1], [0, 0, 1, 1], [], []>} : vector<2x64xbf16>, vector<64x256xbf16>, vector<2x256xf32> -> vector<2x256xf32>
    %52 = vector.broadcast %1 : vector<1x256xf32> to vector<2x256xf32>
    %53 = arith.addf %51, %52 : vector<2x256xf32>
    %54 = vector.extract_strided_slice %53 {offsets = [0, 128], sizes = [2, 32], strides = [1, 1]} : vector<2x256xf32> to vector<2x32xf32>
    %cst_19 = arith.constant 5.000000e-01 : f32
    %55 = vector.broadcast %cst_19 : f32 to vector<2x32xf32>
    %56 = arith.mulf %55, %54 : vector<2x32xf32>
    %57 = math.tanh %56 : vector<2x32xf32>
    %cst_20 = arith.constant 5.000000e-01 : f32
    %58 = vector.broadcast %cst_20 : f32 to vector<2x32xf32>
    %59 = arith.mulf %58, %57 : vector<2x32xf32>
    %cst_21 = arith.constant 5.000000e-01 : f32
    %60 = vector.broadcast %cst_21 : f32 to vector<2x32xf32>
    %61 = arith.addf %59, %60 : vector<2x32xf32>
    %62 = vector.extract_strided_slice %53 {offsets = [0, 160], sizes = [2, 32], strides = [1, 1]} : vector<2x256xf32> to vector<2x32xf32>
    %cst_22 = arith.constant 5.000000e-01 : f32
    %63 = vector.broadcast %cst_22 : f32 to vector<2x32xf32>
    %64 = arith.mulf %63, %62 : vector<2x32xf32>
    %65 = math.tanh %64 : vector<2x32xf32>
    %cst_23 = arith.constant 5.000000e-01 : f32
    %66 = vector.broadcast %cst_23 : f32 to vector<2x32xf32>
    %67 = arith.mulf %66, %65 : vector<2x32xf32>
    %cst_24 = arith.constant 5.000000e-01 : f32
    %68 = vector.broadcast %cst_24 : f32 to vector<2x32xf32>
    %69 = arith.addf %67, %68 : vector<2x32xf32>
    %70 = vector.extract_strided_slice %53 {offsets = [0, 192], sizes = [2, 32], strides = [1, 1]} : vector<2x256xf32> to vector<2x32xf32>
    %71 = vector.extract_strided_slice %53 {offsets = [0, 224], sizes = [2, 32], strides = [1, 1]} : vector<2x256xf32> to vector<2x32xf32>
    %72 = arith.mulf %61, %71 : vector<2x32xf32>
    %73 = arith.addf %70, %72 : vector<2x32xf32>
    %74 = math.tanh %73 : vector<2x32xf32>
    %75 = arith.subf %13, %74 : vector<2x32xf32>
    %76 = arith.mulf %69, %75 : vector<2x32xf32>
    %77 = arith.addf %74, %76 : vector<2x32xf32>
    %78 = vector.extract_strided_slice %11 {offsets = [1, 0, 0], sizes = [1, 2, 96], strides = [1, 1, 1]} : vector<8x2x96xf32> to vector<1x2x96xf32>
    %79 = vector.shape_cast %78 : vector<1x2x96xf32> to vector<2x96xf32>
    %80 = vector.extract_strided_slice %79 {offsets = [0, 0], sizes = [2, 32], strides = [1, 1]} : vector<2x96xf32> to vector<2x32xf32>
    %81 = vector.extract_strided_slice %53 {offsets = [0, 0], sizes = [2, 32], strides = [1, 1]} : vector<2x256xf32> to vector<2x32xf32>
    %82 = arith.addf %80, %81 : vector<2x32xf32>
    %cst_25 = arith.constant 5.000000e-01 : f32
    %83 = vector.broadcast %cst_25 : f32 to vector<2x32xf32>
    %84 = arith.mulf %83, %82 : vector<2x32xf32>
    %85 = math.tanh %84 : vector<2x32xf32>
    %cst_26 = arith.constant 5.000000e-01 : f32
    %86 = vector.broadcast %cst_26 : f32 to vector<2x32xf32>
    %87 = arith.mulf %86, %85 : vector<2x32xf32>
    %cst_27 = arith.constant 5.000000e-01 : f32
    %88 = vector.broadcast %cst_27 : f32 to vector<2x32xf32>
    %89 = arith.addf %87, %88 : vector<2x32xf32>
    %90 = vector.extract_strided_slice %79 {offsets = [0, 32], sizes = [2, 32], strides = [1, 1]} : vector<2x96xf32> to vector<2x32xf32>
    %91 = vector.extract_strided_slice %53 {offsets = [0, 32], sizes = [2, 32], strides = [1, 1]} : vector<2x256xf32> to vector<2x32xf32>
    %92 = arith.addf %90, %91 : vector<2x32xf32>
    %cst_28 = arith.constant 5.000000e-01 : f32
    %93 = vector.broadcast %cst_28 : f32 to vector<2x32xf32>
    %94 = arith.mulf %93, %92 : vector<2x32xf32>
    %95 = math.tanh %94 : vector<2x32xf32>
    %cst_29 = arith.constant 5.000000e-01 : f32
    %96 = vector.broadcast %cst_29 : f32 to vector<2x32xf32>
    %97 = arith.mulf %96, %95 : vector<2x32xf32>
    %cst_30 = arith.constant 5.000000e-01 : f32
    %98 = vector.broadcast %cst_30 : f32 to vector<2x32xf32>
    %99 = arith.addf %97, %98 : vector<2x32xf32>
    %100 = vector.extract_strided_slice %79 {offsets = [0, 64], sizes = [2, 32], strides = [1, 1]} : vector<2x96xf32> to vector<2x32xf32>
    %101 = vector.extract_strided_slice %53 {offsets = [0, 64], sizes = [2, 32], strides = [1, 1]} : vector<2x256xf32> to vector<2x32xf32>
    %102 = arith.mulf %89, %101 : vector<2x32xf32>
    %103 = arith.addf %100, %102 : vector<2x32xf32>
    %104 = math.tanh %103 : vector<2x32xf32>
    %105 = arith.subf %48, %104 : vector<2x32xf32>
    %106 = arith.mulf %99, %105 : vector<2x32xf32>
    %107 = arith.addf %104, %106 : vector<2x32xf32>
    %108 = tpu.concatenate %107, %77 in 1 : vector<2x32xf32>, vector<2x32xf32> -> vector<2x64xf32>
    %109 = arith.truncf %108 : vector<2x64xf32> to vector<2x64xbf16>
    %cst_31 = arith.constant dense<0.000000e+00> : vector<2x256xf32>
    %110 = tpu.matmul %109, %0, %cst_31 {dimension_numbers = #tpu.dot_dimension_numbers<[1], [0], [0], [1], [0, 0, 1, 1], [], []>} : vector<2x64xbf16>, vector<64x256xbf16>, vector<2x256xf32> -> vector<2x256xf32>
    %111 = vector.broadcast %1 : vector<1x256xf32> to vector<2x256xf32>
    %112 = arith.addf %110, %111 : vector<2x256xf32>
    %113 = vector.extract_strided_slice %112 {offsets = [0, 128], sizes = [2, 32], strides = [1, 1]} : vector<2x256xf32> to vector<2x32xf32>
    %cst_32 = arith.constant 5.000000e-01 : f32
    %114 = vector.broadcast %cst_32 : f32 to vector<2x32xf32>
    %115 = arith.mulf %114, %113 : vector<2x32xf32>
    %116 = math.tanh %115 : vector<2x32xf32>
    %cst_33 = arith.constant 5.000000e-01 : f32
    %117 = vector.broadcast %cst_33 : f32 to vector<2x32xf32>
    %118 = arith.mulf %117, %116 : vector<2x32xf32>
    %cst_34 = arith.constant 5.000000e-01 : f32
    %119 = vector.broadcast %cst_34 : f32 to vector<2x32xf32>
    %120 = arith.addf %118, %119 : vector<2x32xf32>
    %121 = vector.extract_strided_slice %112 {offsets = [0, 160], sizes = [2, 32], strides = [1, 1]} : vector<2x256xf32> to vector<2x32xf32>
    %cst_35 = arith.constant 5.000000e-01 : f32
    %122 = vector.broadcast %cst_35 : f32 to vector<2x32xf32>
    %123 = arith.mulf %122, %121 : vector<2x32xf32>
    %124 = math.tanh %123 : vector<2x32xf32>
    %cst_36 = arith.constant 5.000000e-01 : f32
    %125 = vector.broadcast %cst_36 : f32 to vector<2x32xf32>
    %126 = arith.mulf %125, %124 : vector<2x32xf32>
    %cst_37 = arith.constant 5.000000e-01 : f32
    %127 = vector.broadcast %cst_37 : f32 to vector<2x32xf32>
    %128 = arith.addf %126, %127 : vector<2x32xf32>
    %129 = vector.extract_strided_slice %112 {offsets = [0, 192], sizes = [2, 32], strides = [1, 1]} : vector<2x256xf32> to vector<2x32xf32>
    %130 = vector.extract_strided_slice %112 {offsets = [0, 224], sizes = [2, 32], strides = [1, 1]} : vector<2x256xf32> to vector<2x32xf32>
    %131 = arith.mulf %120, %130 : vector<2x32xf32>
    %132 = arith.addf %129, %131 : vector<2x32xf32>
    %133 = math.tanh %132 : vector<2x32xf32>
    %134 = arith.subf %77, %133 : vector<2x32xf32>
    %135 = arith.mulf %128, %134 : vector<2x32xf32>
    %136 = arith.addf %133, %135 : vector<2x32xf32>
    %137 = vector.extract_strided_slice %11 {offsets = [2, 0, 0], sizes = [1, 2, 96], strides = [1, 1, 1]} : vector<8x2x96xf32> to vector<1x2x96xf32>
    %138 = vector.shape_cast %137 : vector<1x2x96xf32> to vector<2x96xf32>
    %139 = vector.extract_strided_slice %138 {offsets = [0, 0], sizes = [2, 32], strides = [1, 1]} : vector<2x96xf32> to vector<2x32xf32>
    %140 = vector.extract_strided_slice %112 {offsets = [0, 0], sizes = [2, 32], strides = [1, 1]} : vector<2x256xf32> to vector<2x32xf32>
    %141 = arith.addf %139, %140 : vector<2x32xf32>
    %cst_38 = arith.constant 5.000000e-01 : f32
    %142 = vector.broadcast %cst_38 : f32 to vector<2x32xf32>
    %143 = arith.mulf %142, %141 : vector<2x32xf32>
    %144 = math.tanh %143 : vector<2x32xf32>
    %cst_39 = arith.constant 5.000000e-01 : f32
    %145 = vector.broadcast %cst_39 : f32 to vector<2x32xf32>
    %146 = arith.mulf %145, %144 : vector<2x32xf32>
    %cst_40 = arith.constant 5.000000e-01 : f32
    %147 = vector.broadcast %cst_40 : f32 to vector<2x32xf32>
    %148 = arith.addf %146, %147 : vector<2x32xf32>
    %149 = vector.extract_strided_slice %138 {offsets = [0, 32], sizes = [2, 32], strides = [1, 1]} : vector<2x96xf32> to vector<2x32xf32>
    %150 = vector.extract_strided_slice %112 {offsets = [0, 32], sizes = [2, 32], strides = [1, 1]} : vector<2x256xf32> to vector<2x32xf32>
    %151 = arith.addf %149, %150 : vector<2x32xf32>
    %cst_41 = arith.constant 5.000000e-01 : f32
    %152 = vector.broadcast %cst_41 : f32 to vector<2x32xf32>
    %153 = arith.mulf %152, %151 : vector<2x32xf32>
    %154 = math.tanh %153 : vector<2x32xf32>
    %cst_42 = arith.constant 5.000000e-01 : f32
    %155 = vector.broadcast %cst_42 : f32 to vector<2x32xf32>
    %156 = arith.mulf %155, %154 : vector<2x32xf32>
    %cst_43 = arith.constant 5.000000e-01 : f32
    %157 = vector.broadcast %cst_43 : f32 to vector<2x32xf32>
    %158 = arith.addf %156, %157 : vector<2x32xf32>
    %159 = vector.extract_strided_slice %138 {offsets = [0, 64], sizes = [2, 32], strides = [1, 1]} : vector<2x96xf32> to vector<2x32xf32>
    %160 = vector.extract_strided_slice %112 {offsets = [0, 64], sizes = [2, 32], strides = [1, 1]} : vector<2x256xf32> to vector<2x32xf32>
    %161 = arith.mulf %148, %160 : vector<2x32xf32>
    %162 = arith.addf %159, %161 : vector<2x32xf32>
    %163 = math.tanh %162 : vector<2x32xf32>
    %164 = arith.subf %107, %163 : vector<2x32xf32>
    %165 = arith.mulf %158, %164 : vector<2x32xf32>
    %166 = arith.addf %163, %165 : vector<2x32xf32>
    %167 = tpu.concatenate %166, %136 in 1 : vector<2x32xf32>, vector<2x32xf32> -> vector<2x64xf32>
    %168 = arith.truncf %167 : vector<2x64xf32> to vector<2x64xbf16>
    %cst_44 = arith.constant dense<0.000000e+00> : vector<2x256xf32>
    %169 = tpu.matmul %168, %0, %cst_44 {dimension_numbers = #tpu.dot_dimension_numbers<[1], [0], [0], [1], [0, 0, 1, 1], [], []>} : vector<2x64xbf16>, vector<64x256xbf16>, vector<2x256xf32> -> vector<2x256xf32>
    %170 = vector.broadcast %1 : vector<1x256xf32> to vector<2x256xf32>
    %171 = arith.addf %169, %170 : vector<2x256xf32>
    %172 = vector.extract_strided_slice %171 {offsets = [0, 128], sizes = [2, 32], strides = [1, 1]} : vector<2x256xf32> to vector<2x32xf32>
    %cst_45 = arith.constant 5.000000e-01 : f32
    %173 = vector.broadcast %cst_45 : f32 to vector<2x32xf32>
    %174 = arith.mulf %173, %172 : vector<2x32xf32>
    %175 = math.tanh %174 : vector<2x32xf32>
    %cst_46 = arith.constant 5.000000e-01 : f32
    %176 = vector.broadcast %cst_46 : f32 to vector<2x32xf32>
    %177 = arith.mulf %176, %175 : vector<2x32xf32>
    %cst_47 = arith.constant 5.000000e-01 : f32
    %178 = vector.broadcast %cst_47 : f32 to vector<2x32xf32>
    %179 = arith.addf %177, %178 : vector<2x32xf32>
    %180 = vector.extract_strided_slice %171 {offsets = [0, 160], sizes = [2, 32], strides = [1, 1]} : vector<2x256xf32> to vector<2x32xf32>
    %cst_48 = arith.constant 5.000000e-01 : f32
    %181 = vector.broadcast %cst_48 : f32 to vector<2x32xf32>
    %182 = arith.mulf %181, %180 : vector<2x32xf32>
    %183 = math.tanh %182 : vector<2x32xf32>
    %cst_49 = arith.constant 5.000000e-01 : f32
    %184 = vector.broadcast %cst_49 : f32 to vector<2x32xf32>
    %185 = arith.mulf %184, %183 : vector<2x32xf32>
    %cst_50 = arith.constant 5.000000e-01 : f32
    %186 = vector.broadcast %cst_50 : f32 to vector<2x32xf32>
    %187 = arith.addf %185, %186 : vector<2x32xf32>
    %188 = vector.extract_strided_slice %171 {offsets = [0, 192], sizes = [2, 32], strides = [1, 1]} : vector<2x256xf32> to vector<2x32xf32>
    %189 = vector.extract_strided_slice %171 {offsets = [0, 224], sizes = [2, 32], strides = [1, 1]} : vector<2x256xf32> to vector<2x32xf32>
    %190 = arith.mulf %179, %189 : vector<2x32xf32>
    %191 = arith.addf %188, %190 : vector<2x32xf32>
    %192 = math.tanh %191 : vector<2x32xf32>
    %193 = arith.subf %136, %192 : vector<2x32xf32>
    %194 = arith.mulf %187, %193 : vector<2x32xf32>
    %195 = arith.addf %192, %194 : vector<2x32xf32>
    %196 = vector.extract_strided_slice %11 {offsets = [3, 0, 0], sizes = [1, 2, 96], strides = [1, 1, 1]} : vector<8x2x96xf32> to vector<1x2x96xf32>
    %197 = vector.shape_cast %196 : vector<1x2x96xf32> to vector<2x96xf32>
    %198 = vector.extract_strided_slice %197 {offsets = [0, 0], sizes = [2, 32], strides = [1, 1]} : vector<2x96xf32> to vector<2x32xf32>
    %199 = vector.extract_strided_slice %171 {offsets = [0, 0], sizes = [2, 32], strides = [1, 1]} : vector<2x256xf32> to vector<2x32xf32>
    %200 = arith.addf %198, %199 : vector<2x32xf32>
    %cst_51 = arith.constant 5.000000e-01 : f32
    %201 = vector.broadcast %cst_51 : f32 to vector<2x32xf32>
    %202 = arith.mulf %201, %200 : vector<2x32xf32>
    %203 = math.tanh %202 : vector<2x32xf32>
    %cst_52 = arith.constant 5.000000e-01 : f32
    %204 = vector.broadcast %cst_52 : f32 to vector<2x32xf32>
    %205 = arith.mulf %204, %203 : vector<2x32xf32>
    %cst_53 = arith.constant 5.000000e-01 : f32
    %206 = vector.broadcast %cst_53 : f32 to vector<2x32xf32>
    %207 = arith.addf %205, %206 : vector<2x32xf32>
    %208 = vector.extract_strided_slice %197 {offsets = [0, 32], sizes = [2, 32], strides = [1, 1]} : vector<2x96xf32> to vector<2x32xf32>
    %209 = vector.extract_strided_slice %171 {offsets = [0, 32], sizes = [2, 32], strides = [1, 1]} : vector<2x256xf32> to vector<2x32xf32>
    %210 = arith.addf %208, %209 : vector<2x32xf32>
    %cst_54 = arith.constant 5.000000e-01 : f32
    %211 = vector.broadcast %cst_54 : f32 to vector<2x32xf32>
    %212 = arith.mulf %211, %210 : vector<2x32xf32>
    %213 = math.tanh %212 : vector<2x32xf32>
    %cst_55 = arith.constant 5.000000e-01 : f32
    %214 = vector.broadcast %cst_55 : f32 to vector<2x32xf32>
    %215 = arith.mulf %214, %213 : vector<2x32xf32>
    %cst_56 = arith.constant 5.000000e-01 : f32
    %216 = vector.broadcast %cst_56 : f32 to vector<2x32xf32>
    %217 = arith.addf %215, %216 : vector<2x32xf32>
    %218 = vector.extract_strided_slice %197 {offsets = [0, 64], sizes = [2, 32], strides = [1, 1]} : vector<2x96xf32> to vector<2x32xf32>
    %219 = vector.extract_strided_slice %171 {offsets = [0, 64], sizes = [2, 32], strides = [1, 1]} : vector<2x256xf32> to vector<2x32xf32>
    %220 = arith.mulf %207, %219 : vector<2x32xf32>
    %221 = arith.addf %218, %220 : vector<2x32xf32>
    %222 = math.tanh %221 : vector<2x32xf32>
    %223 = arith.subf %166, %222 : vector<2x32xf32>
    %224 = arith.mulf %217, %223 : vector<2x32xf32>
    %225 = arith.addf %222, %224 : vector<2x32xf32>
    %226 = tpu.concatenate %225, %195 in 1 : vector<2x32xf32>, vector<2x32xf32> -> vector<2x64xf32>
    %227 = arith.truncf %226 : vector<2x64xf32> to vector<2x64xbf16>
    %cst_57 = arith.constant dense<0.000000e+00> : vector<2x256xf32>
    %228 = tpu.matmul %227, %0, %cst_57 {dimension_numbers = #tpu.dot_dimension_numbers<[1], [0], [0], [1], [0, 0, 1, 1], [], []>} : vector<2x64xbf16>, vector<64x256xbf16>, vector<2x256xf32> -> vector<2x256xf32>
    %229 = vector.broadcast %1 : vector<1x256xf32> to vector<2x256xf32>
    %230 = arith.addf %228, %229 : vector<2x256xf32>
    %231 = vector.extract_strided_slice %230 {offsets = [0, 128], sizes = [2, 32], strides = [1, 1]} : vector<2x256xf32> to vector<2x32xf32>
    %cst_58 = arith.constant 5.000000e-01 : f32
    %232 = vector.broadcast %cst_58 : f32 to vector<2x32xf32>
    %233 = arith.mulf %232, %231 : vector<2x32xf32>
    %234 = math.tanh %233 : vector<2x32xf32>
    %cst_59 = arith.constant 5.000000e-01 : f32
    %235 = vector.broadcast %cst_59 : f32 to vector<2x32xf32>
    %236 = arith.mulf %235, %234 : vector<2x32xf32>
    %cst_60 = arith.constant 5.000000e-01 : f32
    %237 = vector.broadcast %cst_60 : f32 to vector<2x32xf32>
    %238 = arith.addf %236, %237 : vector<2x32xf32>
    %239 = vector.extract_strided_slice %230 {offsets = [0, 160], sizes = [2, 32], strides = [1, 1]} : vector<2x256xf32> to vector<2x32xf32>
    %cst_61 = arith.constant 5.000000e-01 : f32
    %240 = vector.broadcast %cst_61 : f32 to vector<2x32xf32>
    %241 = arith.mulf %240, %239 : vector<2x32xf32>
    %242 = math.tanh %241 : vector<2x32xf32>
    %cst_62 = arith.constant 5.000000e-01 : f32
    %243 = vector.broadcast %cst_62 : f32 to vector<2x32xf32>
    %244 = arith.mulf %243, %242 : vector<2x32xf32>
    %cst_63 = arith.constant 5.000000e-01 : f32
    %245 = vector.broadcast %cst_63 : f32 to vector<2x32xf32>
    %246 = arith.addf %244, %245 : vector<2x32xf32>
    %247 = vector.extract_strided_slice %230 {offsets = [0, 192], sizes = [2, 32], strides = [1, 1]} : vector<2x256xf32> to vector<2x32xf32>
    %248 = vector.extract_strided_slice %230 {offsets = [0, 224], sizes = [2, 32], strides = [1, 1]} : vector<2x256xf32> to vector<2x32xf32>
    %249 = arith.mulf %238, %248 : vector<2x32xf32>
    %250 = arith.addf %247, %249 : vector<2x32xf32>
    %251 = math.tanh %250 : vector<2x32xf32>
    %252 = arith.subf %195, %251 : vector<2x32xf32>
    %253 = arith.mulf %246, %252 : vector<2x32xf32>
    %254 = arith.addf %251, %253 : vector<2x32xf32>
    %255 = vector.extract_strided_slice %11 {offsets = [4, 0, 0], sizes = [1, 2, 96], strides = [1, 1, 1]} : vector<8x2x96xf32> to vector<1x2x96xf32>
    %256 = vector.shape_cast %255 : vector<1x2x96xf32> to vector<2x96xf32>
    %257 = vector.extract_strided_slice %256 {offsets = [0, 0], sizes = [2, 32], strides = [1, 1]} : vector<2x96xf32> to vector<2x32xf32>
    %258 = vector.extract_strided_slice %230 {offsets = [0, 0], sizes = [2, 32], strides = [1, 1]} : vector<2x256xf32> to vector<2x32xf32>
    %259 = arith.addf %257, %258 : vector<2x32xf32>
    %cst_64 = arith.constant 5.000000e-01 : f32
    %260 = vector.broadcast %cst_64 : f32 to vector<2x32xf32>
    %261 = arith.mulf %260, %259 : vector<2x32xf32>
    %262 = math.tanh %261 : vector<2x32xf32>
    %cst_65 = arith.constant 5.000000e-01 : f32
    %263 = vector.broadcast %cst_65 : f32 to vector<2x32xf32>
    %264 = arith.mulf %263, %262 : vector<2x32xf32>
    %cst_66 = arith.constant 5.000000e-01 : f32
    %265 = vector.broadcast %cst_66 : f32 to vector<2x32xf32>
    %266 = arith.addf %264, %265 : vector<2x32xf32>
    %267 = vector.extract_strided_slice %256 {offsets = [0, 32], sizes = [2, 32], strides = [1, 1]} : vector<2x96xf32> to vector<2x32xf32>
    %268 = vector.extract_strided_slice %230 {offsets = [0, 32], sizes = [2, 32], strides = [1, 1]} : vector<2x256xf32> to vector<2x32xf32>
    %269 = arith.addf %267, %268 : vector<2x32xf32>
    %cst_67 = arith.constant 5.000000e-01 : f32
    %270 = vector.broadcast %cst_67 : f32 to vector<2x32xf32>
    %271 = arith.mulf %270, %269 : vector<2x32xf32>
    %272 = math.tanh %271 : vector<2x32xf32>
    %cst_68 = arith.constant 5.000000e-01 : f32
    %273 = vector.broadcast %cst_68 : f32 to vector<2x32xf32>
    %274 = arith.mulf %273, %272 : vector<2x32xf32>
    %cst_69 = arith.constant 5.000000e-01 : f32
    %275 = vector.broadcast %cst_69 : f32 to vector<2x32xf32>
    %276 = arith.addf %274, %275 : vector<2x32xf32>
    %277 = vector.extract_strided_slice %256 {offsets = [0, 64], sizes = [2, 32], strides = [1, 1]} : vector<2x96xf32> to vector<2x32xf32>
    %278 = vector.extract_strided_slice %230 {offsets = [0, 64], sizes = [2, 32], strides = [1, 1]} : vector<2x256xf32> to vector<2x32xf32>
    %279 = arith.mulf %266, %278 : vector<2x32xf32>
    %280 = arith.addf %277, %279 : vector<2x32xf32>
    %281 = math.tanh %280 : vector<2x32xf32>
    %282 = arith.subf %225, %281 : vector<2x32xf32>
    %283 = arith.mulf %276, %282 : vector<2x32xf32>
    %284 = arith.addf %281, %283 : vector<2x32xf32>
    %285 = tpu.concatenate %284, %254 in 1 : vector<2x32xf32>, vector<2x32xf32> -> vector<2x64xf32>
    %286 = arith.truncf %285 : vector<2x64xf32> to vector<2x64xbf16>
    %cst_70 = arith.constant dense<0.000000e+00> : vector<2x256xf32>
    %287 = tpu.matmul %286, %0, %cst_70 {dimension_numbers = #tpu.dot_dimension_numbers<[1], [0], [0], [1], [0, 0, 1, 1], [], []>} : vector<2x64xbf16>, vector<64x256xbf16>, vector<2x256xf32> -> vector<2x256xf32>
    %288 = vector.broadcast %1 : vector<1x256xf32> to vector<2x256xf32>
    %289 = arith.addf %287, %288 : vector<2x256xf32>
    %290 = vector.extract_strided_slice %289 {offsets = [0, 128], sizes = [2, 32], strides = [1, 1]} : vector<2x256xf32> to vector<2x32xf32>
    %cst_71 = arith.constant 5.000000e-01 : f32
    %291 = vector.broadcast %cst_71 : f32 to vector<2x32xf32>
    %292 = arith.mulf %291, %290 : vector<2x32xf32>
    %293 = math.tanh %292 : vector<2x32xf32>
    %cst_72 = arith.constant 5.000000e-01 : f32
    %294 = vector.broadcast %cst_72 : f32 to vector<2x32xf32>
    %295 = arith.mulf %294, %293 : vector<2x32xf32>
    %cst_73 = arith.constant 5.000000e-01 : f32
    %296 = vector.broadcast %cst_73 : f32 to vector<2x32xf32>
    %297 = arith.addf %295, %296 : vector<2x32xf32>
    %298 = vector.extract_strided_slice %289 {offsets = [0, 160], sizes = [2, 32], strides = [1, 1]} : vector<2x256xf32> to vector<2x32xf32>
    %cst_74 = arith.constant 5.000000e-01 : f32
    %299 = vector.broadcast %cst_74 : f32 to vector<2x32xf32>
    %300 = arith.mulf %299, %298 : vector<2x32xf32>
    %301 = math.tanh %300 : vector<2x32xf32>
    %cst_75 = arith.constant 5.000000e-01 : f32
    %302 = vector.broadcast %cst_75 : f32 to vector<2x32xf32>
    %303 = arith.mulf %302, %301 : vector<2x32xf32>
    %cst_76 = arith.constant 5.000000e-01 : f32
    %304 = vector.broadcast %cst_76 : f32 to vector<2x32xf32>
    %305 = arith.addf %303, %304 : vector<2x32xf32>
    %306 = vector.extract_strided_slice %289 {offsets = [0, 192], sizes = [2, 32], strides = [1, 1]} : vector<2x256xf32> to vector<2x32xf32>
    %307 = vector.extract_strided_slice %289 {offsets = [0, 224], sizes = [2, 32], strides = [1, 1]} : vector<2x256xf32> to vector<2x32xf32>
    %308 = arith.mulf %297, %307 : vector<2x32xf32>
    %309 = arith.addf %306, %308 : vector<2x32xf32>
    %310 = math.tanh %309 : vector<2x32xf32>
    %311 = arith.subf %254, %310 : vector<2x32xf32>
    %312 = arith.mulf %305, %311 : vector<2x32xf32>
    %313 = arith.addf %310, %312 : vector<2x32xf32>
    %314 = vector.extract_strided_slice %11 {offsets = [5, 0, 0], sizes = [1, 2, 96], strides = [1, 1, 1]} : vector<8x2x96xf32> to vector<1x2x96xf32>
    %315 = vector.shape_cast %314 : vector<1x2x96xf32> to vector<2x96xf32>
    %316 = vector.extract_strided_slice %315 {offsets = [0, 0], sizes = [2, 32], strides = [1, 1]} : vector<2x96xf32> to vector<2x32xf32>
    %317 = vector.extract_strided_slice %289 {offsets = [0, 0], sizes = [2, 32], strides = [1, 1]} : vector<2x256xf32> to vector<2x32xf32>
    %318 = arith.addf %316, %317 : vector<2x32xf32>
    %cst_77 = arith.constant 5.000000e-01 : f32
    %319 = vector.broadcast %cst_77 : f32 to vector<2x32xf32>
    %320 = arith.mulf %319, %318 : vector<2x32xf32>
    %321 = math.tanh %320 : vector<2x32xf32>
    %cst_78 = arith.constant 5.000000e-01 : f32
    %322 = vector.broadcast %cst_78 : f32 to vector<2x32xf32>
    %323 = arith.mulf %322, %321 : vector<2x32xf32>
    %cst_79 = arith.constant 5.000000e-01 : f32
    %324 = vector.broadcast %cst_79 : f32 to vector<2x32xf32>
    %325 = arith.addf %323, %324 : vector<2x32xf32>
    %326 = vector.extract_strided_slice %315 {offsets = [0, 32], sizes = [2, 32], strides = [1, 1]} : vector<2x96xf32> to vector<2x32xf32>
    %327 = vector.extract_strided_slice %289 {offsets = [0, 32], sizes = [2, 32], strides = [1, 1]} : vector<2x256xf32> to vector<2x32xf32>
    %328 = arith.addf %326, %327 : vector<2x32xf32>
    %cst_80 = arith.constant 5.000000e-01 : f32
    %329 = vector.broadcast %cst_80 : f32 to vector<2x32xf32>
    %330 = arith.mulf %329, %328 : vector<2x32xf32>
    %331 = math.tanh %330 : vector<2x32xf32>
    %cst_81 = arith.constant 5.000000e-01 : f32
    %332 = vector.broadcast %cst_81 : f32 to vector<2x32xf32>
    %333 = arith.mulf %332, %331 : vector<2x32xf32>
    %cst_82 = arith.constant 5.000000e-01 : f32
    %334 = vector.broadcast %cst_82 : f32 to vector<2x32xf32>
    %335 = arith.addf %333, %334 : vector<2x32xf32>
    %336 = vector.extract_strided_slice %315 {offsets = [0, 64], sizes = [2, 32], strides = [1, 1]} : vector<2x96xf32> to vector<2x32xf32>
    %337 = vector.extract_strided_slice %289 {offsets = [0, 64], sizes = [2, 32], strides = [1, 1]} : vector<2x256xf32> to vector<2x32xf32>
    %338 = arith.mulf %325, %337 : vector<2x32xf32>
    %339 = arith.addf %336, %338 : vector<2x32xf32>
    %340 = math.tanh %339 : vector<2x32xf32>
    %341 = arith.subf %284, %340 : vector<2x32xf32>
    %342 = arith.mulf %335, %341 : vector<2x32xf32>
    %343 = arith.addf %340, %342 : vector<2x32xf32>
    %344 = tpu.concatenate %343, %313 in 1 : vector<2x32xf32>, vector<2x32xf32> -> vector<2x64xf32>
    %345 = arith.truncf %344 : vector<2x64xf32> to vector<2x64xbf16>
    %cst_83 = arith.constant dense<0.000000e+00> : vector<2x256xf32>
    %346 = tpu.matmul %345, %0, %cst_83 {dimension_numbers = #tpu.dot_dimension_numbers<[1], [0], [0], [1], [0, 0, 1, 1], [], []>} : vector<2x64xbf16>, vector<64x256xbf16>, vector<2x256xf32> -> vector<2x256xf32>
    %347 = vector.broadcast %1 : vector<1x256xf32> to vector<2x256xf32>
    %348 = arith.addf %346, %347 : vector<2x256xf32>
    %349 = vector.extract_strided_slice %348 {offsets = [0, 128], sizes = [2, 32], strides = [1, 1]} : vector<2x256xf32> to vector<2x32xf32>
    %cst_84 = arith.constant 5.000000e-01 : f32
    %350 = vector.broadcast %cst_84 : f32 to vector<2x32xf32>
    %351 = arith.mulf %350, %349 : vector<2x32xf32>
    %352 = math.tanh %351 : vector<2x32xf32>
    %cst_85 = arith.constant 5.000000e-01 : f32
    %353 = vector.broadcast %cst_85 : f32 to vector<2x32xf32>
    %354 = arith.mulf %353, %352 : vector<2x32xf32>
    %cst_86 = arith.constant 5.000000e-01 : f32
    %355 = vector.broadcast %cst_86 : f32 to vector<2x32xf32>
    %356 = arith.addf %354, %355 : vector<2x32xf32>
    %357 = vector.extract_strided_slice %348 {offsets = [0, 160], sizes = [2, 32], strides = [1, 1]} : vector<2x256xf32> to vector<2x32xf32>
    %cst_87 = arith.constant 5.000000e-01 : f32
    %358 = vector.broadcast %cst_87 : f32 to vector<2x32xf32>
    %359 = arith.mulf %358, %357 : vector<2x32xf32>
    %360 = math.tanh %359 : vector<2x32xf32>
    %cst_88 = arith.constant 5.000000e-01 : f32
    %361 = vector.broadcast %cst_88 : f32 to vector<2x32xf32>
    %362 = arith.mulf %361, %360 : vector<2x32xf32>
    %cst_89 = arith.constant 5.000000e-01 : f32
    %363 = vector.broadcast %cst_89 : f32 to vector<2x32xf32>
    %364 = arith.addf %362, %363 : vector<2x32xf32>
    %365 = vector.extract_strided_slice %348 {offsets = [0, 192], sizes = [2, 32], strides = [1, 1]} : vector<2x256xf32> to vector<2x32xf32>
    %366 = vector.extract_strided_slice %348 {offsets = [0, 224], sizes = [2, 32], strides = [1, 1]} : vector<2x256xf32> to vector<2x32xf32>
    %367 = arith.mulf %356, %366 : vector<2x32xf32>
    %368 = arith.addf %365, %367 : vector<2x32xf32>
    %369 = math.tanh %368 : vector<2x32xf32>
    %370 = arith.subf %313, %369 : vector<2x32xf32>
    %371 = arith.mulf %364, %370 : vector<2x32xf32>
    %372 = arith.addf %369, %371 : vector<2x32xf32>
    %373 = vector.extract_strided_slice %11 {offsets = [6, 0, 0], sizes = [1, 2, 96], strides = [1, 1, 1]} : vector<8x2x96xf32> to vector<1x2x96xf32>
    %374 = vector.shape_cast %373 : vector<1x2x96xf32> to vector<2x96xf32>
    %375 = vector.extract_strided_slice %374 {offsets = [0, 0], sizes = [2, 32], strides = [1, 1]} : vector<2x96xf32> to vector<2x32xf32>
    %376 = vector.extract_strided_slice %348 {offsets = [0, 0], sizes = [2, 32], strides = [1, 1]} : vector<2x256xf32> to vector<2x32xf32>
    %377 = arith.addf %375, %376 : vector<2x32xf32>
    %cst_90 = arith.constant 5.000000e-01 : f32
    %378 = vector.broadcast %cst_90 : f32 to vector<2x32xf32>
    %379 = arith.mulf %378, %377 : vector<2x32xf32>
    %380 = math.tanh %379 : vector<2x32xf32>
    %cst_91 = arith.constant 5.000000e-01 : f32
    %381 = vector.broadcast %cst_91 : f32 to vector<2x32xf32>
    %382 = arith.mulf %381, %380 : vector<2x32xf32>
    %cst_92 = arith.constant 5.000000e-01 : f32
    %383 = vector.broadcast %cst_92 : f32 to vector<2x32xf32>
    %384 = arith.addf %382, %383 : vector<2x32xf32>
    %385 = vector.extract_strided_slice %374 {offsets = [0, 32], sizes = [2, 32], strides = [1, 1]} : vector<2x96xf32> to vector<2x32xf32>
    %386 = vector.extract_strided_slice %348 {offsets = [0, 32], sizes = [2, 32], strides = [1, 1]} : vector<2x256xf32> to vector<2x32xf32>
    %387 = arith.addf %385, %386 : vector<2x32xf32>
    %cst_93 = arith.constant 5.000000e-01 : f32
    %388 = vector.broadcast %cst_93 : f32 to vector<2x32xf32>
    %389 = arith.mulf %388, %387 : vector<2x32xf32>
    %390 = math.tanh %389 : vector<2x32xf32>
    %cst_94 = arith.constant 5.000000e-01 : f32
    %391 = vector.broadcast %cst_94 : f32 to vector<2x32xf32>
    %392 = arith.mulf %391, %390 : vector<2x32xf32>
    %cst_95 = arith.constant 5.000000e-01 : f32
    %393 = vector.broadcast %cst_95 : f32 to vector<2x32xf32>
    %394 = arith.addf %392, %393 : vector<2x32xf32>
    %395 = vector.extract_strided_slice %374 {offsets = [0, 64], sizes = [2, 32], strides = [1, 1]} : vector<2x96xf32> to vector<2x32xf32>
    %396 = vector.extract_strided_slice %348 {offsets = [0, 64], sizes = [2, 32], strides = [1, 1]} : vector<2x256xf32> to vector<2x32xf32>
    %397 = arith.mulf %384, %396 : vector<2x32xf32>
    %398 = arith.addf %395, %397 : vector<2x32xf32>
    %399 = math.tanh %398 : vector<2x32xf32>
    %400 = arith.subf %343, %399 : vector<2x32xf32>
    %401 = arith.mulf %394, %400 : vector<2x32xf32>
    %402 = arith.addf %399, %401 : vector<2x32xf32>
    %403 = tpu.concatenate %402, %372 in 1 : vector<2x32xf32>, vector<2x32xf32> -> vector<2x64xf32>
    %404 = arith.truncf %403 : vector<2x64xf32> to vector<2x64xbf16>
    %cst_96 = arith.constant dense<0.000000e+00> : vector<2x256xf32>
    %405 = tpu.matmul %404, %0, %cst_96 {dimension_numbers = #tpu.dot_dimension_numbers<[1], [0], [0], [1], [0, 0, 1, 1], [], []>} : vector<2x64xbf16>, vector<64x256xbf16>, vector<2x256xf32> -> vector<2x256xf32>
    %406 = vector.broadcast %1 : vector<1x256xf32> to vector<2x256xf32>
    %407 = arith.addf %405, %406 : vector<2x256xf32>
    %408 = vector.extract_strided_slice %407 {offsets = [0, 128], sizes = [2, 32], strides = [1, 1]} : vector<2x256xf32> to vector<2x32xf32>
    %cst_97 = arith.constant 5.000000e-01 : f32
    %409 = vector.broadcast %cst_97 : f32 to vector<2x32xf32>
    %410 = arith.mulf %409, %408 : vector<2x32xf32>
    %411 = math.tanh %410 : vector<2x32xf32>
    %cst_98 = arith.constant 5.000000e-01 : f32
    %412 = vector.broadcast %cst_98 : f32 to vector<2x32xf32>
    %413 = arith.mulf %412, %411 : vector<2x32xf32>
    %cst_99 = arith.constant 5.000000e-01 : f32
    %414 = vector.broadcast %cst_99 : f32 to vector<2x32xf32>
    %415 = arith.addf %413, %414 : vector<2x32xf32>
    %416 = vector.extract_strided_slice %407 {offsets = [0, 160], sizes = [2, 32], strides = [1, 1]} : vector<2x256xf32> to vector<2x32xf32>
    %cst_100 = arith.constant 5.000000e-01 : f32
    %417 = vector.broadcast %cst_100 : f32 to vector<2x32xf32>
    %418 = arith.mulf %417, %416 : vector<2x32xf32>
    %419 = math.tanh %418 : vector<2x32xf32>
    %cst_101 = arith.constant 5.000000e-01 : f32
    %420 = vector.broadcast %cst_101 : f32 to vector<2x32xf32>
    %421 = arith.mulf %420, %419 : vector<2x32xf32>
    %cst_102 = arith.constant 5.000000e-01 : f32
    %422 = vector.broadcast %cst_102 : f32 to vector<2x32xf32>
    %423 = arith.addf %421, %422 : vector<2x32xf32>
    %424 = vector.extract_strided_slice %407 {offsets = [0, 192], sizes = [2, 32], strides = [1, 1]} : vector<2x256xf32> to vector<2x32xf32>
    %425 = vector.extract_strided_slice %407 {offsets = [0, 224], sizes = [2, 32], strides = [1, 1]} : vector<2x256xf32> to vector<2x32xf32>
    %426 = arith.mulf %415, %425 : vector<2x32xf32>
    %427 = arith.addf %424, %426 : vector<2x32xf32>
    %428 = math.tanh %427 : vector<2x32xf32>
    %429 = arith.subf %372, %428 : vector<2x32xf32>
    %430 = arith.mulf %423, %429 : vector<2x32xf32>
    %431 = arith.addf %428, %430 : vector<2x32xf32>
    %432 = vector.extract_strided_slice %11 {offsets = [7, 0, 0], sizes = [1, 2, 96], strides = [1, 1, 1]} : vector<8x2x96xf32> to vector<1x2x96xf32>
    %433 = vector.shape_cast %432 : vector<1x2x96xf32> to vector<2x96xf32>
    %434 = vector.extract_strided_slice %433 {offsets = [0, 0], sizes = [2, 32], strides = [1, 1]} : vector<2x96xf32> to vector<2x32xf32>
    %435 = vector.extract_strided_slice %407 {offsets = [0, 0], sizes = [2, 32], strides = [1, 1]} : vector<2x256xf32> to vector<2x32xf32>
    %436 = arith.addf %434, %435 : vector<2x32xf32>
    %cst_103 = arith.constant 5.000000e-01 : f32
    %437 = vector.broadcast %cst_103 : f32 to vector<2x32xf32>
    %438 = arith.mulf %437, %436 : vector<2x32xf32>
    %439 = math.tanh %438 : vector<2x32xf32>
    %cst_104 = arith.constant 5.000000e-01 : f32
    %440 = vector.broadcast %cst_104 : f32 to vector<2x32xf32>
    %441 = arith.mulf %440, %439 : vector<2x32xf32>
    %cst_105 = arith.constant 5.000000e-01 : f32
    %442 = vector.broadcast %cst_105 : f32 to vector<2x32xf32>
    %443 = arith.addf %441, %442 : vector<2x32xf32>
    %444 = vector.extract_strided_slice %433 {offsets = [0, 32], sizes = [2, 32], strides = [1, 1]} : vector<2x96xf32> to vector<2x32xf32>
    %445 = vector.extract_strided_slice %407 {offsets = [0, 32], sizes = [2, 32], strides = [1, 1]} : vector<2x256xf32> to vector<2x32xf32>
    %446 = arith.addf %444, %445 : vector<2x32xf32>
    %cst_106 = arith.constant 5.000000e-01 : f32
    %447 = vector.broadcast %cst_106 : f32 to vector<2x32xf32>
    %448 = arith.mulf %447, %446 : vector<2x32xf32>
    %449 = math.tanh %448 : vector<2x32xf32>
    %cst_107 = arith.constant 5.000000e-01 : f32
    %450 = vector.broadcast %cst_107 : f32 to vector<2x32xf32>
    %451 = arith.mulf %450, %449 : vector<2x32xf32>
    %cst_108 = arith.constant 5.000000e-01 : f32
    %452 = vector.broadcast %cst_108 : f32 to vector<2x32xf32>
    %453 = arith.addf %451, %452 : vector<2x32xf32>
    %454 = vector.extract_strided_slice %433 {offsets = [0, 64], sizes = [2, 32], strides = [1, 1]} : vector<2x96xf32> to vector<2x32xf32>
    %455 = vector.extract_strided_slice %407 {offsets = [0, 64], sizes = [2, 32], strides = [1, 1]} : vector<2x256xf32> to vector<2x32xf32>
    %456 = arith.mulf %443, %455 : vector<2x32xf32>
    %457 = arith.addf %454, %456 : vector<2x32xf32>
    %458 = math.tanh %457 : vector<2x32xf32>
    %459 = arith.subf %402, %458 : vector<2x32xf32>
    %460 = arith.mulf %453, %459 : vector<2x32xf32>
    %461 = arith.addf %458, %460 : vector<2x32xf32>
    %462 = tpu.concatenate %461, %431 in 1 : vector<2x32xf32>, vector<2x32xf32> -> vector<2x64xf32>
    %463 = arith.truncf %462 : vector<2x64xf32> to vector<2x64xbf16>
    %cst_109 = arith.constant dense<0.000000e+00> : vector<2x256xf32>
    %464 = tpu.matmul %463, %0, %cst_109 {dimension_numbers = #tpu.dot_dimension_numbers<[1], [0], [0], [1], [0, 0, 1, 1], [], []>} : vector<2x64xbf16>, vector<64x256xbf16>, vector<2x256xf32> -> vector<2x256xf32>
    %465 = vector.broadcast %1 : vector<1x256xf32> to vector<2x256xf32>
    %466 = arith.addf %464, %465 : vector<2x256xf32>
    %467 = vector.extract_strided_slice %466 {offsets = [0, 128], sizes = [2, 32], strides = [1, 1]} : vector<2x256xf32> to vector<2x32xf32>
    %cst_110 = arith.constant 5.000000e-01 : f32
    %468 = vector.broadcast %cst_110 : f32 to vector<2x32xf32>
    %469 = arith.mulf %468, %467 : vector<2x32xf32>
    %470 = math.tanh %469 : vector<2x32xf32>
    %cst_111 = arith.constant 5.000000e-01 : f32
    %471 = vector.broadcast %cst_111 : f32 to vector<2x32xf32>
    %472 = arith.mulf %471, %470 : vector<2x32xf32>
    %cst_112 = arith.constant 5.000000e-01 : f32
    %473 = vector.broadcast %cst_112 : f32 to vector<2x32xf32>
    %474 = arith.addf %472, %473 : vector<2x32xf32>
    %475 = vector.extract_strided_slice %466 {offsets = [0, 160], sizes = [2, 32], strides = [1, 1]} : vector<2x256xf32> to vector<2x32xf32>
    %cst_113 = arith.constant 5.000000e-01 : f32
    %476 = vector.broadcast %cst_113 : f32 to vector<2x32xf32>
    %477 = arith.mulf %476, %475 : vector<2x32xf32>
    %478 = math.tanh %477 : vector<2x32xf32>
    %cst_114 = arith.constant 5.000000e-01 : f32
    %479 = vector.broadcast %cst_114 : f32 to vector<2x32xf32>
    %480 = arith.mulf %479, %478 : vector<2x32xf32>
    %cst_115 = arith.constant 5.000000e-01 : f32
    %481 = vector.broadcast %cst_115 : f32 to vector<2x32xf32>
    %482 = arith.addf %480, %481 : vector<2x32xf32>
    %483 = vector.extract_strided_slice %466 {offsets = [0, 192], sizes = [2, 32], strides = [1, 1]} : vector<2x256xf32> to vector<2x32xf32>
    %484 = vector.extract_strided_slice %466 {offsets = [0, 224], sizes = [2, 32], strides = [1, 1]} : vector<2x256xf32> to vector<2x32xf32>
    %485 = arith.mulf %474, %484 : vector<2x32xf32>
    %486 = arith.addf %483, %485 : vector<2x32xf32>
    %487 = math.tanh %486 : vector<2x32xf32>
    %488 = arith.subf %431, %487 : vector<2x32xf32>
    %489 = arith.mulf %482, %488 : vector<2x32xf32>
    %490 = arith.addf %487, %489 : vector<2x32xf32>
    %c0_116 = arith.constant 0 : index
    %c0_117 = arith.constant 0 : index
    %491 = vector.load %arg5[%c0_116, %c0_117] : memref<1x32xf32, #tpu.memory_space<vmem>>, vector<1x32xf32>
    %492 = vector.broadcast %491 : vector<1x32xf32> to vector<2x32xf32>
    %493 = arith.mulf %490, %492 : vector<2x32xf32>
    %cst_118 = arith.constant dense<0.000000e+00> : vector<2xf32>
    %494 = vector.multi_reduction <add>, %493, %cst_118 [1] : vector<2x32xf32> to vector<2xf32>
    %495 = vector.shape_cast %494 : vector<2xf32> to vector<2x1xf32>
    %c0_119 = arith.constant 0 : index
    %c0_120 = arith.constant 0 : index
    %496 = vector.load %arg6[%c0_119, %c0_120] : memref<1x1xf32, #tpu.memory_space<vmem>>, vector<1x1xf32>
    %497 = vector.broadcast %496 : vector<1x1xf32> to vector<2x1xf32>
    %498 = arith.addf %495, %497 : vector<2x1xf32>
    %c0_121 = arith.constant 0 : index
    %c0_122 = arith.constant 0 : index
    %499 = vector.load %arg7[%c0_121, %c0_122] : memref<2x1xf32, #tpu.memory_space<vmem>>, vector<2x1xf32>
    tpu.vector_store %arg7[%c0_121, %c0_122], %498 {strides = array<i32>} : memref<2x1xf32, #tpu.memory_space<vmem>>, vector<2x1xf32>,
    return
  }
}

</mosaic_0001>

<bundles_post_ra>
// kernel: gru_net_forward.1
= control target key start
LH: loop header
LB: loop body
LE: loop exit
PB: predicated region body
PF: predicated region fallthrough
CT: control target
= control target key end

     0   :  { %s1579_s0 = inlined_call_operand.vmem [shape: f32[8,2,1], index: 0, kind: input, shape index: {}]   ;;  %s1580_s1 = inlined_call_operand.vmem [shape: f32[1,96], index: 1, kind: input, shape index: {}]   ;;  %s1581_s2 = inlined_call_operand.vmem [shape: f32[1,96], index: 2, kind: input, shape index: {}]   ;;  %s1582_s3 = inlined_call_operand.hbm [shape: bf16[64,256], index: 3, kind: input, shape index: {}]   ;;  %s1583_s4 = inlined_call_operand.vmem [shape: f32[1,256], index: 4, kind: input, shape index: {}]   ;;  %s1584_s5 = inlined_call_operand.vmem [shape: f32[1,32], index: 5, kind: input, shape index: {}]   ;;  %s1585_s6 = inlined_call_operand.<no memory space> [shape: f32[1,1], index: 6, kind: input, shape index: {}]   ;;  %s1586_s7 = inlined_call_operand.vmem [shape: f32[2,1], index: 7, kind: output, shape index: {}]  }
   0x1   :  { %v12_v0 = vstv %s1585_s6 }
   0x2   :  { %13 = vst [vmem:[#allocation2] sm:$0x1] %v12_v0 }
   0x3   :  { %14 = vsyncpa [#allocation4], 0  ;;  %s1241_s26 = smov [#allocation3]   ;;  %s1217_s30 = scalar_lea.hbm %s1582_s3, 1024 }
   0x4   :  { %s26_s27 = sshll.u32 %s1241_s26, 4  ;;  %p1218_p0 = scmp.ne.s32.totalorder %s1582_s3, %s1217_s30  ;;  %s27_s27 = int_to_ptr.vmem [resolvable:$true] %s26_s27 }
   0x5   :  { %p1221_p1 = scmp.lt.u32.totalorder %s1217_s30, %s1582_s3 }
   0x7   :  { %p1223_p2 = pnand %p1221_p1, %p1218_p0 }
   0x9   :  { %1226 = shalt.err (!%p1223_p2)
}
   0xa   :  { %s1227_s6 = scalar_lea.vmem %s27_s27, 1024  ;;  %p1232_p4 = scmp.lt.s32.totalorder %s27_s27, %s27_s27 }
   0xb   :  { %p1228_p3 = scmp.ne.s32.totalorder %s27_s27, %s1227_s6  ;;  %p1233_p5 = scmp.lt.s32.totalorder %s1227_s6, %s1227_s6 }
   0xd   :  { %p1234_p6 = por %p1233_p5, %p1232_p4 }
   0xf   :  { %p1235_p7 = pnand %p1234_p6, %p1228_p3 }
  0x11   :  { %1238 = shalt.err (!%p1235_p7)
}
  0x12   :  { %s1242_s12 = smov 128   ;;  %s1243_s13 = smov 8  }
  0x13   :  { %32 = dma.hbm_to_vmem [thread:$0]  %s1582_s3, 1024, %s27_s27, [#allocation4], %s1242_s12, %s1242_s12, %s1243_s13  }
  0x14   :  { %1239 = dma.done.wait [#allocation4], 1024  }
  0x15   :  { %1240 = vsyncadd [#allocation4], 4294966272  ;;  %v1244_v1 = vmov 0   ;;  %v1308_v2 = vld [vmem:[#allocation3 + $0x4] ss:$8 sps:$4 sm:$0xff]   ;;  %v1245_v11 = vmov 0.0|0.0   ;;  %v132_v12 = vlaneseq }
  0x16   :  { %218 = vmatprep.mubr.bf16.mxu0 %v1244_v1  ;;  %1139 = vset.pattern.permute.xlu0 %v1244_v1  ;;  %v1310_v3 = vld [vmem:[#allocation3] ss:$8 sps:$4 sm:$0xff]   ;;  %v1313_v4 = vld [vmem:[#allocation3 + $0x14] ss:$8 sps:$4 sm:$0xff]   ;;  %v1317_v5 = vld [vmem:[#allocation3 + $0x10] ss:$8 sps:$4 sm:$0xff]  }
  0x17   :  { %295 = vmatprep.mubr.bf16.mxu1 %v1244_v1  ;;  %1140 = vset.pattern.permute.xlu1 %v1244_v1  ;;  %v1321_v6 = vld [vmem:[#allocation3 + $0x24] ss:$8 sps:$4 sm:$0xff]   ;;  %v52_v7 = vld [vmem:[%s1579_s0] sm:$0x3]  ;;  %v1336_v10 = vld [vmem:[#allocation3 + $0x30] ss:$8 sps:$4 sm:$0xff]  }
  0x18   :  { %186 = vmatprep.subr.bf16.mxu0 %v1308_v2  ;;  %263 = vmatprep.subr.bf16.mxu1 %v1308_v2  ;;  %v1328_v8 = vld [vmem:[#allocation3 + $0x20] ss:$8 sps:$4 sm:$0xff]   ;;  %v1332_v9 = vld [vmem:[#allocation3 + $0x34] ss:$8 sps:$4 sm:$0xff]   ;;  %v133_v13 = vshrl.u32 %v132_v12, 7  ;;  %s1246_s19 = smov 64  }
  0x19   :  { %187 = vmatpush1.bf16.msra.mxu0 %v1310_v3  ;;  %264 = vmatpush1.bf16.msra.mxu1 %v1310_v3  ;;  %v51_v15 = vld [vmem:[%s1583_s4] sm:$0x3]  ;;  %v53_v40 = vld [vmem:[%s1579_s0 + $0x2] sm:$0x3]  ;;  %vm257_vm0 = vcmask 261120   ;;  %vm182_vm1 = vcmask 523264  }
  0x1a   :  { %188 = vmatprep.subr.bf16.mxu0 %v1313_v4  ;;  %265 = vmatprep.subr.bf16.mxu1 %v1313_v4  ;;  %v134_v14 = vsub.s32 0, %v133_v13  ;;  %v1364_v22 = vld [vmem:[%s1580_s1] ss:$0 sm:$0xff]  ;;  %s1247_s1 = smov 96   ;;  %v138_v46 = vsub.s32 1, %v133_v13  ;;  %vm1092_vm2 = vcmask 254976  }
  0x1b   :  { %63 = vperm.xlu0 %1139, %v52_v7   ;;  %v1370_v25 = vld [vmem:[%s1581_s2] ss:$0 sm:$0xff]  ;;  %s1248_s2 = smov 32   ;;  %vm1104_vm3 = vcmask 1024  }
  0x1c   :  { %v1357_v16 = vrot.slane %v51_v15, %v134_v14  ;;  %v1391_v47 = vrot.slane %v51_v15, %v138_v46 }
  0x1d   :  { %189 = vmatpush1.bf16.msra.mxu0 %v1317_v5  ;;  %266 = vmatpush1.bf16.msra.mxu1 %v1317_v5 }
  0x1e   :  { %190 = vmatprep.subr.bf16.mxu0 %v1321_v6  ;;  %267 = vmatprep.subr.bf16.mxu1 %v1321_v6 }
  0x21   :  { %191 = vmatpush1.bf16.msra.mxu0 %v1328_v8  ;;  %268 = vmatpush1.bf16.msra.mxu1 %v1328_v8 }
  0x22   :  { %192 = vmatprep.subr.bf16.mxu0 %v1332_v9  ;;  %269 = vmatprep.subr.bf16.mxu1 %v1332_v9 }
  0x25   :  { %193 = vmatpush1.bf16.msra.mxu0 %v1336_v10  ;;  %270 = vmatpush1.bf16.msra.mxu1 %v1336_v10 }
  0x26   :  { %370 = vmatprep.subr.bf16.mxu0 %v1308_v2  ;;  %477 = vmatprep.subr.bf16.mxu1 %v1308_v2 }
  0x28   :  { %219 = vmatmul.mubr.bf16.vlgmr.msra.gmra.mrb[0].mxu0 %v1245_v11 }
  0x29   :  { %371 = vmatpush1.bf16.msra.mxu0 %v1310_v3  ;;  %402 = vmatprep.mubr.bf16.mxu0 %v1244_v1 }
  0x2a   :  { %372 = vmatprep.subr.bf16.mxu0 %v1313_v4 }
  0x2d   :  { %373 = vmatpush1.bf16.msra.mxu0 %v1317_v5 }
  0x2e   :  { %374 = vmatprep.subr.bf16.mxu0 %v1321_v6 }
  0x31   :  { %375 = vmatpush1.bf16.msra.mxu0 %v1328_v8 }
  0x32   :  { %376 = vmatprep.subr.bf16.mxu0 %v1332_v9 }
  0x35   :  { %377 = vmatpush1.bf16.msra.mxu0 %v1336_v10 }
  0x36   :  { %584 = vmatprep.subr.bf16.mxu0 %v1308_v2 }
  0x9a   :  { %v64_v23 = vpop.permute.xlu0 %63 }
  0x9b   :  { %v107_v24 = vmul.f32 %v1364_v22, %v64_v23 }
  0x9d   :  { %v122_v26 = vadd.f32 %v1370_v25, %v107_v24 }
  0xfb   :  { %v220_v17 = vpop.f32.mrb[0].mxu0 }
  0xfc   :  { %v221_v18 = vadd.f32 %v220_v17, %v1357_v16  ;;  %v222_v19 = vpop.f32.mrb[1].mxu0 }
  0xfd   :  { %v223_v20 = vpop.f32.mrb[2].mxu0 }
  0xfe   :  { %v224_v21 = vpop.f32.mrb[3].mxu0  ;;  %232 = vrot.lane.b32.xlu0 %v221_v18, %s1246_s19  ;;  %v226_v27 = vadd.f32 %v221_v18, %v122_v26 }
 0x100   :  { %v227_v28 = vmul.f32 0.5, %v226_v27 }
 0x102   :  { %1153 = vtanh.f32 %v227_v28 }
 0x10c   :  { %v1154_v29 = vpop.eup %1153 }
 0x10d   :  { %v229_v30 = vmul.f32 0.5, %v1154_v29 }
 0x10f   :  { %v230_v31 = vadd.f32 0.5, %v229_v30 }
 0x170   :  { %v233_v32 = vpop.permute.xlu0 %232 }
 0x171   :  { %v235_v33 = vmul.f32 %v233_v32, %v230_v31 }
 0x173   :  { %237 = vrot.lane.b32.xlu1 %v235_v33, %s1246_s19 }
 0x1e5   :  { %v238_v34 = vpop.permute.xlu1 %237 }
 0x1e6   :  { %v240_v35 = vadd.f32 %v238_v34, %v122_v26  ;;  %v54_v34 = vld [vmem:[%s1579_s0 + $0x4] sm:$0x3] }
 0x1e8   :  { %1155 = vtanh.f32 %v240_v35 }
 0x1f2   :  { %v1156_v36 = vpop.eup %1155 }
 0x1f3   :  { %v242_v37 = vsub.f32 0.0, %v1156_v36 }
 0x1f5   :  { %244 = vrot.lane.b32.xlu1 %v242_v37, %s1247_s1 }
 0x267   :  { %v245_v38 = vpop.permute.xlu1 %244 }
 0x268   :  { %v247_v39 = vmul.f32 %v245_v38, %v230_v31 }
 0x26a   :  { %249 = vrot.lane.b32.xlu0 %v247_v39, %s1248_s2 }
 0x26e   :  { %68 = vperm.xlu0 %1139, %v53_v40  }
 0x2dc   :  { %v250_v41 = vpop.permute.xlu0 %249 }
 0x2dd   :  { %v252_v42 = vadd.f32 %v1156_v36, %v250_v41 }
 0x2df   :  { %254 = vrot.lane.b32.xlu1 %v252_v42, %s1246_s19 }
 0x2ed   :  { %v69_v54 = vpop.permute.xlu0 %68 }
 0x2ee   :  { %v108_v55 = vmul.f32 %v1364_v22, %v69_v54 }
 0x2f0   :  { %v123_v56 = vadd.f32 %v1370_v25, %v108_v55 }
 0x351   :  { %v255_v43 = vpop.permute.xlu1 %254 }
 0x352   :  { %v258_v44 = vsel %vm257_vm0, %v255_v43, 0.0 }
 0x353   :  { %v259_v45 = vpack.c.bf16 %v258_v44, %v258_v44 }
 0x355   :  { %1121 = vmatmul.mubr.msk.bf16.vlgmr.msra.gmra.mrb[0].mxu1 %vm182_vm1, %v259_v45 }
 0x356   :  { %478 = vmatpush1.bf16.msra.mxu1 %v1310_v3  ;;  %509 = vmatprep.mubr.bf16.mxu1 %v1244_v1 }
 0x357   :  { %479 = vmatprep.subr.bf16.mxu1 %v1313_v4 }
 0x35a   :  { %480 = vmatpush1.bf16.msra.mxu1 %v1317_v5 }
 0x35b   :  { %481 = vmatprep.subr.bf16.mxu1 %v1321_v6 }
 0x35e   :  { %482 = vmatpush1.bf16.msra.mxu1 %v1328_v8 }
 0x35f   :  { %483 = vmatprep.subr.bf16.mxu1 %v1332_v9 }
 0x362   :  { %484 = vmatpush1.bf16.msra.mxu1 %v1336_v10 }
 0x363   :  { %691 = vmatprep.subr.bf16.mxu1 %v1308_v2 }
 0x428   :  { %v297_v48 = vpop.f32.mrb[0].mxu1 }
 0x429   :  { %v298_v49 = vadd.f32 %v297_v48, %v1357_v16  ;;  %v299_v50 = vpop.f32.mrb[1].mxu1 }
 0x42a   :  { %v300_v51 = vadd.f32 %v299_v50, %v1391_v47  ;;  %v301_v52 = vpop.f32.mrb[2].mxu1 }
 0x42b   :  { %v302_v53 = vpop.f32.mrb[3].mxu1  ;;  %336 = vrot.lane.b32.xlu0 %v298_v49, %s1246_s19  ;;  %v330_v57 = vadd.f32 %v298_v49, %v123_v56 }
 0x42c   :  { %309 = vrot.lane.b32.xlu1 %v300_v51, %s1248_s2  ;;  %v304_v59 = vmul.f32 0.5, %v300_v51 }
 0x42d   :  { %v331_v58 = vmul.f32 0.5, %v330_v57 }
 0x42f   :  { %1157 = vtanh.f32 %v331_v58 }
 0x430   :  { %1159 = vtanh.f32 %v304_v59 }
 0x439   :  { %v1158_v60 = vpop.eup %1157 }
 0x43a   :  { %v1160_v61 = vpop.eup %1159  ;;  %v333_v62 = vmul.f32 0.5, %v1158_v60 }
 0x43b   :  { %v306_v63 = vmul.f32 0.5, %v1160_v61 }
 0x43c   :  { %v334_v0 = vadd.f32 0.5, %v333_v62 }
 0x43d   :  { %v307_v11 = vadd.f32 0.5, %v306_v63 }
 0x49d   :  { %v337_v7 = vpop.permute.xlu0 %336 }
 0x49e   :  { %v339_v12 = vmul.f32 %v337_v7, %v334_v0  ;;  %v310_v13 = vpop.permute.xlu1 %309 }
 0x49f   :  { %v312_v14 = vmul.f32 %v310_v13, %v307_v11 }
 0x4a0   :  { %341 = vrot.lane.b32.xlu0 %v339_v12, %s1246_s19 }
 0x4a1   :  { %314 = vrot.lane.b32.xlu1 %v312_v14, %s1246_s19 }
 0x512   :  { %v342_v15 = vpop.permute.xlu0 %341 }
 0x513   :  { %v344_v17 = vadd.f32 %v342_v15, %v123_v56  ;;  %v315_v18 = vpop.permute.xlu1 %314 }
 0x514   :  { %v317_v19 = vadd.f32 %v315_v18, %v300_v51 }
 0x515   :  { %1161 = vtanh.f32 %v344_v17 }
 0x516   :  { %1163 = vtanh.f32 %v317_v19 }
 0x51f   :  { %v1162_v20 = vpop.eup %1161 }
 0x520   :  { %v1164_v21 = vpop.eup %1163  ;;  %v346_v23 = vsub.f32 %v252_v42, %v1162_v20 }
 0x521   :  { %v319_v24 = vsub.f32 0.0, %v1164_v21 }
 0x522   :  { %348 = vrot.lane.b32.xlu0 %v346_v23, %s1247_s1 }
 0x523   :  { %321 = vrot.lane.b32.xlu1 %v319_v24, %s1247_s1 }
 0x594   :  { %v349_v26 = vpop.permute.xlu0 %348 }
 0x595   :  { %v351_v27 = vmul.f32 %v349_v26, %v334_v0  ;;  %v322_v28 = vpop.permute.xlu1 %321  ;;  %v55_v26 = vld [vmem:[%s1579_s0 + $0x6] sm:$0x3] }
 0x596   :  { %v324_v29 = vmul.f32 %v322_v28, %v307_v11 }
 0x597   :  { %353 = vrot.lane.b32.xlu0 %v351_v27, %s1248_s2 }
 0x598   :  { %326 = vrot.lane.b32.xlu1 %v324_v29, %s1248_s2 }
 0x609   :  { %v354_v30 = vpop.permute.xlu0 %353 }
 0x60a   :  { %v356_v31 = vadd.f32 %v1162_v20, %v354_v30  ;;  %v327_v32 = vpop.permute.xlu1 %326 }
 0x60b   :  { %v329_v33 = vadd.f32 %v1164_v21, %v327_v32 }
 0x60c   :  { %358 = vrot.lane.b32.xlu1 %v356_v31, %s1246_s19 }
 0x60d   :  { %362 = vrot.lane.b32.xlu0 %v329_v33, %s1247_s1 }
 0x610   :  { %73 = vperm.xlu1 %1140, %v54_v34  }
 0x67e   :  { %v359_v35 = vpop.permute.xlu1 %358 }
 0x67f   :  { %v363_v36 = vpop.permute.xlu0 %362 }
 0x680   :  { %v365_v37 = vsel %vm257_vm0, %v359_v35, %v363_v36 }
 0x681   :  { %v366_v38 = vpack.c.bf16 %v365_v37, %v365_v37 }
 0x683   :  { %1122 = vmatmul.mubr.msk.bf16.vlgmr.msra.gmra.mrb[4].mxu0 %vm182_vm1, %v366_v38 }
 0x684   :  { %585 = vmatpush1.bf16.msra.mxu0 %v1310_v3  ;;  %616 = vmatprep.mubr.bf16.mxu0 %v1244_v1 }
 0x685   :  { %586 = vmatprep.subr.bf16.mxu0 %v1313_v4 }
 0x688   :  { %587 = vmatpush1.bf16.msra.mxu0 %v1317_v5 }
 0x689   :  { %588 = vmatprep.subr.bf16.mxu0 %v1321_v6 }
 0x68c   :  { %589 = vmatpush1.bf16.msra.mxu0 %v1328_v8 }
 0x68d   :  { %590 = vmatprep.subr.bf16.mxu0 %v1332_v9 }
 0x68f   :  { %v74_v45 = vpop.permute.xlu1 %73 }
 0x690   :  { %591 = vmatpush1.bf16.msra.mxu0 %v1336_v10  ;;  %v109_v46 = vmul.f32 %v1364_v22, %v74_v45 }
 0x691   :  { %798 = vmatprep.subr.bf16.mxu0 %v1308_v2 }
 0x692   :  { %v124_v48 = vadd.f32 %v1370_v25, %v109_v46 }
 0x756   :  { %v404_v39 = vpop.f32.mrb[4].mxu0 }
 0x757   :  { %v405_v40 = vadd.f32 %v404_v39, %v1357_v16  ;;  %v406_v41 = vpop.f32.mrb[5].mxu0 }
 0x758   :  { %v407_v42 = vadd.f32 %v406_v41, %v1391_v47  ;;  %v408_v43 = vpop.f32.mrb[6].mxu0 }
 0x759   :  { %v409_v44 = vpop.f32.mrb[7].mxu0  ;;  %443 = vrot.lane.b32.xlu1 %v405_v40, %s1246_s19  ;;  %v437_v49 = vadd.f32 %v405_v40, %v124_v48 }
 0x75a   :  { %416 = vrot.lane.b32.xlu0 %v407_v42, %s1248_s2  ;;  %v411_v51 = vmul.f32 0.5, %v407_v42 }
 0x75b   :  { %v438_v50 = vmul.f32 0.5, %v437_v49 }
 0x75d   :  { %1165 = vtanh.f32 %v438_v50 }
 0x75e   :  { %1167 = vtanh.f32 %v411_v51 }
 0x767   :  { %v1166_v52 = vpop.eup %1165 }
 0x768   :  { %v1168_v53 = vpop.eup %1167  ;;  %v440_v54 = vmul.f32 0.5, %v1166_v52 }
 0x769   :  { %v413_v55 = vmul.f32 0.5, %v1168_v53 }
 0x76a   :  { %v441_v56 = vadd.f32 0.5, %v440_v54 }
 0x76b   :  { %v414_v58 = vadd.f32 0.5, %v413_v55 }
 0x7cb   :  { %v444_v57 = vpop.permute.xlu1 %443 }
 0x7cc   :  { %v446_v59 = vmul.f32 %v444_v57, %v441_v56  ;;  %v417_v60 = vpop.permute.xlu0 %416 }
 0x7cd   :  { %v419_v61 = vmul.f32 %v417_v60, %v414_v58 }
 0x7ce   :  { %448 = vrot.lane.b32.xlu1 %v446_v59, %s1246_s19 }
 0x7cf   :  { %421 = vrot.lane.b32.xlu0 %v419_v61, %s1246_s19 }
 0x840   :  { %v449_v62 = vpop.permute.xlu1 %448 }
 0x841   :  { %v451_v63 = vadd.f32 %v449_v62, %v124_v48  ;;  %v422_v0 = vpop.permute.xlu0 %421 }
 0x842   :  { %v424_v7 = vadd.f32 %v422_v0, %v407_v42 }
 0x843   :  { %1169 = vtanh.f32 %v451_v63 }
 0x844   :  { %1171 = vtanh.f32 %v424_v7 }
 0x84d   :  { %v1170_v11 = vpop.eup %1169 }
 0x84e   :  { %v1172_v12 = vpop.eup %1171  ;;  %v453_v13 = vsub.f32 %v356_v31, %v1170_v11 }
 0x84f   :  { %v426_v14 = vsub.f32 %v329_v33, %v1172_v12 }
 0x850   :  { %455 = vrot.lane.b32.xlu1 %v453_v13, %s1247_s1 }
 0x851   :  { %428 = vrot.lane.b32.xlu0 %v426_v14, %s1247_s1 }
 0x8c2   :  { %v456_v15 = vpop.permute.xlu1 %455 }
 0x8c3   :  { %v458_v17 = vmul.f32 %v456_v15, %v441_v56  ;;  %v429_v18 = vpop.permute.xlu0 %428  ;;  %v56_v15 = vld [vmem:[%s1579_s0 + $0x8] sm:$0x3] }
 0x8c4   :  { %v431_v19 = vmul.f32 %v429_v18, %v414_v58 }
 0x8c5   :  { %460 = vrot.lane.b32.xlu1 %v458_v17, %s1248_s2 }
 0x8c6   :  { %433 = vrot.lane.b32.xlu0 %v431_v19, %s1248_s2 }
 0x937   :  { %v461_v20 = vpop.permute.xlu1 %460 }
 0x938   :  { %v463_v21 = vadd.f32 %v1170_v11, %v461_v20  ;;  %v434_v23 = vpop.permute.xlu0 %433 }
 0x939   :  { %v436_v24 = vadd.f32 %v1172_v12, %v434_v23 }
 0x93a   :  { %465 = vrot.lane.b32.xlu0 %v463_v21, %s1246_s19 }
 0x93b   :  { %469 = vrot.lane.b32.xlu1 %v436_v24, %s1247_s1 }
 0x93e   :  { %78 = vperm.xlu0 %1139, %v55_v26  }
 0x9ac   :  { %v466_v27 = vpop.permute.xlu0 %465 }
 0x9ad   :  { %v470_v28 = vpop.permute.xlu1 %469 }
 0x9ae   :  { %v472_v29 = vsel %vm257_vm0, %v466_v27, %v470_v28 }
 0x9af   :  { %v473_v30 = vpack.c.bf16 %v472_v29, %v472_v29 }
 0x9b1   :  { %1123 = vmatmul.mubr.msk.bf16.vlgmr.msra.gmra.mrb[4].mxu1 %vm182_vm1, %v473_v30 }
 0x9b2   :  { %692 = vmatpush1.bf16.msra.mxu1 %v1310_v3  ;;  %723 = vmatprep.mubr.bf16.mxu1 %v1244_v1 }
 0x9b3   :  { %693 = vmatprep.subr.bf16.mxu1 %v1313_v4 }
 0x9b6   :  { %694 = vmatpush1.bf16.msra.mxu1 %v1317_v5 }
 0x9b7   :  { %695 = vmatprep.subr.bf16.mxu1 %v1321_v6 }
 0x9ba   :  { %696 = vmatpush1.bf16.msra.mxu1 %v1328_v8 }
 0x9bb   :  { %697 = vmatprep.subr.bf16.mxu1 %v1332_v9 }
 0x9bd   :  { %v79_v37 = vpop.permute.xlu0 %78 }
 0x9be   :  { %698 = vmatpush1.bf16.msra.mxu1 %v1336_v10  ;;  %v110_v38 = vmul.f32 %v1364_v22, %v79_v37 }
 0x9bf   :  { %905 = vmatprep.subr.bf16.mxu1 %v1308_v2 }
 0x9c0   :  { %v125_v39 = vadd.f32 %v1370_v25, %v110_v38 }
 0xa84   :  { %v511_v31 = vpop.f32.mrb[4].mxu1 }
 0xa85   :  { %v512_v32 = vadd.f32 %v511_v31, %v1357_v16  ;;  %v513_v33 = vpop.f32.mrb[5].mxu1 }
 0xa86   :  { %v514_v34 = vadd.f32 %v513_v33, %v1391_v47  ;;  %v515_v35 = vpop.f32.mrb[6].mxu1 }
 0xa87   :  { %v516_v36 = vpop.f32.mrb[7].mxu1  ;;  %550 = vrot.lane.b32.xlu0 %v512_v32, %s1246_s19  ;;  %v544_v40 = vadd.f32 %v512_v32, %v125_v39 }
 0xa88   :  { %523 = vrot.lane.b32.xlu1 %v514_v34, %s1248_s2  ;;  %v518_v42 = vmul.f32 0.5, %v514_v34 }
 0xa89   :  { %v545_v41 = vmul.f32 0.5, %v544_v40 }
 0xa8b   :  { %1173 = vtanh.f32 %v545_v41 }
 0xa8c   :  { %1175 = vtanh.f32 %v518_v42 }
 0xa95   :  { %v1174_v43 = vpop.eup %1173 }
 0xa96   :  { %v1176_v44 = vpop.eup %1175  ;;  %v547_v45 = vmul.f32 0.5, %v1174_v43 }
 0xa97   :  { %v520_v46 = vmul.f32 0.5, %v1176_v44 }
 0xa98   :  { %v548_v48 = vadd.f32 0.5, %v547_v45 }
 0xa99   :  { %v521_v50 = vadd.f32 0.5, %v520_v46 }
 0xaf9   :  { %v551_v49 = vpop.permute.xlu0 %550 }
 0xafa   :  { %v553_v51 = vmul.f32 %v551_v49, %v548_v48  ;;  %v524_v52 = vpop.permute.xlu1 %523 }
 0xafb   :  { %v526_v53 = vmul.f32 %v524_v52, %v521_v50 }
 0xafc   :  { %555 = vrot.lane.b32.xlu0 %v553_v51, %s1246_s19 }
 0xafd   :  { %528 = vrot.lane.b32.xlu1 %v526_v53, %s1246_s19 }
 0xb6e   :  { %v556_v54 = vpop.permute.xlu0 %555 }
 0xb6f   :  { %v558_v55 = vadd.f32 %v556_v54, %v125_v39  ;;  %v529_v56 = vpop.permute.xlu1 %528 }
 0xb70   :  { %v531_v57 = vadd.f32 %v529_v56, %v514_v34 }
 0xb71   :  { %1177 = vtanh.f32 %v558_v55 }
 0xb72   :  { %1179 = vtanh.f32 %v531_v57 }
 0xb7b   :  { %v1178_v58 = vpop.eup %1177 }
 0xb7c   :  { %v1180_v59 = vpop.eup %1179  ;;  %v560_v60 = vsub.f32 %v463_v21, %v1178_v58 }
 0xb7d   :  { %v533_v61 = vsub.f32 %v436_v24, %v1180_v59 }
 0xb7e   :  { %562 = vrot.lane.b32.xlu0 %v560_v60, %s1247_s1 }
 0xb7f   :  { %535 = vrot.lane.b32.xlu1 %v533_v61, %s1247_s1  ;;  %v57_v61 = vld [vmem:[%s1579_s0 + $0xa] sm:$0x3] }
 0xbf0   :  { %v563_v62 = vpop.permute.xlu0 %562 }
 0xbf1   :  { %v565_v63 = vmul.f32 %v563_v62, %v548_v48  ;;  %v536_v0 = vpop.permute.xlu1 %535 }
 0xbf2   :  { %v538_v7 = vmul.f32 %v536_v0, %v521_v50 }
 0xbf3   :  { %567 = vrot.lane.b32.xlu0 %v565_v63, %s1248_s2 }
 0xbf4   :  { %540 = vrot.lane.b32.xlu1 %v538_v7, %s1248_s2 }
 0xc65   :  { %v568_v11 = vpop.permute.xlu0 %567 }
 0xc66   :  { %v570_v12 = vadd.f32 %v1178_v58, %v568_v11  ;;  %v541_v13 = vpop.permute.xlu1 %540 }
 0xc67   :  { %v543_v14 = vadd.f32 %v1180_v59, %v541_v13 }
 0xc68   :  { %572 = vrot.lane.b32.xlu1 %v570_v12, %s1246_s19 }
 0xc69   :  { %576 = vrot.lane.b32.xlu0 %v543_v14, %s1247_s1 }
 0xc6c   :  { %83 = vperm.xlu1 %1140, %v56_v15  }
 0xcda   :  { %v573_v17 = vpop.permute.xlu1 %572 }
 0xcdb   :  { %v577_v18 = vpop.permute.xlu0 %576 }
 0xcdc   :  { %v579_v19 = vsel %vm257_vm0, %v573_v17, %v577_v18 }
 0xcdd   :  { %v580_v20 = vpack.c.bf16 %v579_v19, %v579_v19 }
 0xcdf   :  { %1124 = vmatmul.mubr.msk.bf16.vlgmr.msra.gmra.mrb[8].mxu0 %vm182_vm1, %v580_v20 }
 0xce0   :  { %799 = vmatpush1.bf16.msra.mxu0 %v1310_v3  ;;  %830 = vmatprep.mubr.bf16.mxu0 %v1244_v1 }
 0xce1   :  { %800 = vmatprep.subr.bf16.mxu0 %v1313_v4 }
 0xce4   :  { %801 = vmatpush1.bf16.msra.mxu0 %v1317_v5 }
 0xce5   :  { %802 = vmatprep.subr.bf16.mxu0 %v1321_v6 }
 0xce8   :  { %803 = vmatpush1.bf16.msra.mxu0 %v1328_v8 }
 0xce9   :  { %804 = vmatprep.subr.bf16.mxu0 %v1332_v9 }
 0xceb   :  { %v84_v29 = vpop.permute.xlu1 %83 }
 0xcec   :  { %805 = vmatpush1.bf16.msra.mxu0 %v1336_v10  ;;  %v111_v30 = vmul.f32 %v1364_v22, %v84_v29 }
 0xced   :  { %1012 = vmatprep.subr.bf16.mxu0 %v1308_v2 }
 0xcee   :  { %v126_v31 = vadd.f32 %v1370_v25, %v111_v30 }
 0xdb2   :  { %v618_v21 = vpop.f32.mrb[8].mxu0 }
 0xdb3   :  { %v619_v23 = vadd.f32 %v618_v21, %v1357_v16  ;;  %v620_v24 = vpop.f32.mrb[9].mxu0 }
 0xdb4   :  { %v621_v26 = vadd.f32 %v620_v24, %v1391_v47  ;;  %v622_v27 = vpop.f32.mrb[10].mxu0 }
 0xdb5   :  { %v623_v28 = vpop.f32.mrb[11].mxu0  ;;  %657 = vrot.lane.b32.xlu1 %v619_v23, %s1246_s19  ;;  %v651_v32 = vadd.f32 %v619_v23, %v126_v31 }
 0xdb6   :  { %630 = vrot.lane.b32.xlu0 %v621_v26, %s1248_s2  ;;  %v625_v2 = vmul.f32 0.5, %v621_v26 }
 0xdb7   :  { %v652_v33 = vmul.f32 0.5, %v651_v32 }
 0xdb9   :  { %1181 = vtanh.f32 %v652_v33 }
 0xdba   :  { %1183 = vtanh.f32 %v625_v2 }
 0xdc3   :  { %v1182_v34 = vpop.eup %1181 }
 0xdc4   :  { %v1184_v35 = vpop.eup %1183  ;;  %v654_v36 = vmul.f32 0.5, %v1182_v34 }
 0xdc5   :  { %v627_v37 = vmul.f32 0.5, %v1184_v35 }
 0xdc6   :  { %v655_v38 = vadd.f32 0.5, %v654_v36 }
 0xdc7   :  { %v628_v40 = vadd.f32 0.5, %v627_v37 }
 0xe27   :  { %v658_v39 = vpop.permute.xlu1 %657 }
 0xe28   :  { %v660_v41 = vmul.f32 %v658_v39, %v655_v38  ;;  %v631_v42 = vpop.permute.xlu0 %630 }
 0xe29   :  { %v633_v43 = vmul.f32 %v631_v42, %v628_v40 }
 0xe2a   :  { %662 = vrot.lane.b32.xlu1 %v660_v41, %s1246_s19 }
 0xe2b   :  { %635 = vrot.lane.b32.xlu0 %v633_v43, %s1246_s19 }
 0xe9c   :  { %v663_v44 = vpop.permute.xlu1 %662 }
 0xe9d   :  { %v665_v45 = vadd.f32 %v663_v44, %v126_v31  ;;  %v636_v46 = vpop.permute.xlu0 %635 }
 0xe9e   :  { %v638_v48 = vadd.f32 %v636_v46, %v621_v26 }
 0xe9f   :  { %1185 = vtanh.f32 %v665_v45 }
 0xea0   :  { %1187 = vtanh.f32 %v638_v48 }
 0xea9   :  { %v1186_v49 = vpop.eup %1185 }
 0xeaa   :  { %v1188_v50 = vpop.eup %1187  ;;  %v667_v51 = vsub.f32 %v570_v12, %v1186_v49 }
 0xeab   :  { %v640_v52 = vsub.f32 %v543_v14, %v1188_v50 }
 0xeac   :  { %669 = vrot.lane.b32.xlu1 %v667_v51, %s1247_s1 }
 0xead   :  { %642 = vrot.lane.b32.xlu0 %v640_v52, %s1247_s1  ;;  %v58_v52 = vld [vmem:[%s1579_s0 + $0xc] sm:$0x3] }
 0xf1e   :  { %v670_v53 = vpop.permute.xlu1 %669 }
 0xf1f   :  { %v672_v54 = vmul.f32 %v670_v53, %v655_v38  ;;  %v643_v55 = vpop.permute.xlu0 %642 }
 0xf20   :  { %v645_v56 = vmul.f32 %v643_v55, %v628_v40 }
 0xf21   :  { %674 = vrot.lane.b32.xlu1 %v672_v54, %s1248_s2 }
 0xf22   :  { %647 = vrot.lane.b32.xlu0 %v645_v56, %s1248_s2 }
 0xf93   :  { %v675_v57 = vpop.permute.xlu1 %674 }
 0xf94   :  { %v677_v58 = vadd.f32 %v1186_v49, %v675_v57  ;;  %v648_v59 = vpop.permute.xlu0 %647 }
 0xf95   :  { %v650_v60 = vadd.f32 %v1188_v50, %v648_v59 }
 0xf96   :  { %679 = vrot.lane.b32.xlu0 %v677_v58, %s1246_s19 }
 0xf97   :  { %683 = vrot.lane.b32.xlu1 %v650_v60, %s1247_s1 }
 0xf9a   :  { %88 = vperm.xlu0 %1139, %v57_v61  }
0x1008   :  { %v680_v62 = vpop.permute.xlu0 %679 }
0x1009   :  { %v684_v63 = vpop.permute.xlu1 %683 }
0x100a   :  { %v686_v0 = vsel %vm257_vm0, %v680_v62, %v684_v63 }
0x100b   :  { %v687_v7 = vpack.c.bf16 %v686_v0, %v686_v0 }
0x100d   :  { %1125 = vmatmul.mubr.msk.bf16.vlgmr.msra.gmra.mrb[8].mxu1 %vm182_vm1, %v687_v7 }
0x100e   :  { %906 = vmatpush1.bf16.msra.mxu1 %v1310_v3  ;;  %937 = vmatprep.mubr.bf16.mxu1 %v1244_v1 }
0x100f   :  { %907 = vmatprep.subr.bf16.mxu1 %v1313_v4 }
0x1012   :  { %908 = vmatpush1.bf16.msra.mxu1 %v1317_v5 }
0x1013   :  { %909 = vmatprep.subr.bf16.mxu1 %v1321_v6 }
0x1016   :  { %910 = vmatpush1.bf16.msra.mxu1 %v1328_v8 }
0x1017   :  { %911 = vmatprep.subr.bf16.mxu1 %v1332_v9 }
0x1019   :  { %v89_v18 = vpop.permute.xlu0 %88 }
0x101a   :  { %912 = vmatpush1.bf16.msra.mxu1 %v1336_v10  ;;  %v112_v19 = vmul.f32 %v1364_v22, %v89_v18 }
0x101c   :  { %v127_v20 = vadd.f32 %v1370_v25, %v112_v19 }
0x10e0   :  { %v725_v11 = vpop.f32.mrb[8].mxu1 }
0x10e1   :  { %v726_v12 = vadd.f32 %v725_v11, %v1357_v16  ;;  %v727_v13 = vpop.f32.mrb[9].mxu1 }
0x10e2   :  { %v728_v14 = vadd.f32 %v727_v13, %v1391_v47  ;;  %v729_v15 = vpop.f32.mrb[10].mxu1 }
0x10e3   :  { %v730_v17 = vpop.f32.mrb[11].mxu1  ;;  %764 = vrot.lane.b32.xlu0 %v726_v12, %s1246_s19  ;;  %v758_v21 = vadd.f32 %v726_v12, %v127_v20 }
0x10e4   :  { %737 = vrot.lane.b32.xlu1 %v728_v14, %s1248_s2  ;;  %v732_v24 = vmul.f32 0.5, %v728_v14 }
0x10e5   :  { %v759_v23 = vmul.f32 0.5, %v758_v21 }
0x10e7   :  { %1189 = vtanh.f32 %v759_v23 }
0x10e8   :  { %1191 = vtanh.f32 %v732_v24 }
0x10f1   :  { %v1190_v26 = vpop.eup %1189 }
0x10f2   :  { %v1192_v27 = vpop.eup %1191  ;;  %v761_v28 = vmul.f32 0.5, %v1190_v26 }
0x10f3   :  { %v734_v29 = vmul.f32 0.5, %v1192_v27 }
0x10f4   :  { %v762_v30 = vadd.f32 0.5, %v761_v28 }
0x10f5   :  { %v735_v32 = vadd.f32 0.5, %v734_v29 }
0x1155   :  { %v765_v31 = vpop.permute.xlu0 %764 }
0x1156   :  { %v767_v33 = vmul.f32 %v765_v31, %v762_v30  ;;  %v738_v2 = vpop.permute.xlu1 %737 }
0x1157   :  { %v740_v34 = vmul.f32 %v738_v2, %v735_v32 }
0x1158   :  { %769 = vrot.lane.b32.xlu0 %v767_v33, %s1246_s19 }
0x1159   :  { %742 = vrot.lane.b32.xlu1 %v740_v34, %s1246_s19  ;;  %v59_v34 = vld [vmem:[%s1579_s0 + $0xe] sm:$0x3] }
0x11ca   :  { %v770_v35 = vpop.permute.xlu0 %769 }
0x11cb   :  { %v772_v36 = vadd.f32 %v770_v35, %v127_v20  ;;  %v743_v37 = vpop.permute.xlu1 %742 }
0x11cc   :  { %v745_v38 = vadd.f32 %v743_v37, %v728_v14 }
0x11cd   :  { %1193 = vtanh.f32 %v772_v36 }
0x11ce   :  { %1195 = vtanh.f32 %v745_v38 }
0x11d7   :  { %v1194_v39 = vpop.eup %1193 }
0x11d8   :  { %v1196_v40 = vpop.eup %1195  ;;  %v774_v41 = vsub.f32 %v677_v58, %v1194_v39 }
0x11d9   :  { %v747_v42 = vsub.f32 %v650_v60, %v1196_v40 }
0x11da   :  { %776 = vrot.lane.b32.xlu0 %v774_v41, %s1247_s1 }
0x11db   :  { %749 = vrot.lane.b32.xlu1 %v747_v42, %s1247_s1 }
0x124c   :  { %v777_v43 = vpop.permute.xlu0 %776 }
0x124d   :  { %v779_v44 = vmul.f32 %v777_v43, %v762_v30  ;;  %v750_v45 = vpop.permute.xlu1 %749 }
0x124e   :  { %v752_v46 = vmul.f32 %v750_v45, %v735_v32 }
0x124f   :  { %781 = vrot.lane.b32.xlu0 %v779_v44, %s1248_s2 }
0x1250   :  { %754 = vrot.lane.b32.xlu1 %v752_v46, %s1248_s2 }
0x12c1   :  { %v782_v48 = vpop.permute.xlu0 %781 }
0x12c2   :  { %v784_v49 = vadd.f32 %v1194_v39, %v782_v48  ;;  %v755_v50 = vpop.permute.xlu1 %754 }
0x12c3   :  { %v757_v51 = vadd.f32 %v1196_v40, %v755_v50 }
0x12c4   :  { %786 = vrot.lane.b32.xlu1 %v784_v49, %s1246_s19 }
0x12c5   :  { %790 = vrot.lane.b32.xlu0 %v757_v51, %s1247_s1 }
0x12c8   :  { %93 = vperm.xlu1 %1140, %v58_v52  }
0x1336   :  { %v787_v53 = vpop.permute.xlu1 %786 }
0x1337   :  { %v791_v54 = vpop.permute.xlu0 %790 }
0x1338   :  { %v793_v55 = vsel %vm257_vm0, %v787_v53, %v791_v54 }
0x1339   :  { %v794_v56 = vpack.c.bf16 %v793_v55, %v793_v55 }
0x133b   :  { %1126 = vmatmul.mubr.msk.bf16.vlgmr.msra.gmra.mrb[12].mxu0 %vm182_vm1, %v794_v56 }
0x133c   :  { %1013 = vmatpush1.bf16.msra.mxu0 %v1310_v3  ;;  %1044 = vmatprep.mubr.bf16.mxu0 %v1244_v1 }
0x133d   :  { %1014 = vmatprep.subr.bf16.mxu0 %v1313_v4 }
0x1340   :  { %1015 = vmatpush1.bf16.msra.mxu0 %v1317_v5 }
0x1341   :  { %1016 = vmatprep.subr.bf16.mxu0 %v1321_v6 }
0x1344   :  { %1017 = vmatpush1.bf16.msra.mxu0 %v1328_v8 }
0x1345   :  { %1018 = vmatprep.subr.bf16.mxu0 %v1332_v9 }
0x1347   :  { %v94_v4 = vpop.permute.xlu1 %93 }
0x1348   :  { %1019 = vmatpush1.bf16.msra.mxu0 %v1336_v10  ;;  %v113_v5 = vmul.f32 %v1364_v22, %v94_v4 }
0x134a   :  { %v128_v6 = vadd.f32 %v1370_v25, %v113_v5 }
0x140e   :  { %v832_v57 = vpop.f32.mrb[12].mxu0 }
0x140f   :  { %v833_v58 = vadd.f32 %v832_v57, %v1357_v16  ;;  %v834_v59 = vpop.f32.mrb[13].mxu0 }
0x1410   :  { %v835_v3 = vadd.f32 %v834_v59, %v1391_v47  ;;  %v836_v60 = vpop.f32.mrb[14].mxu0 }
0x1411   :  { %v837_v1 = vpop.f32.mrb[15].mxu0  ;;  %871 = vrot.lane.b32.xlu1 %v833_v58, %s1246_s19  ;;  %v865_v8 = vadd.f32 %v833_v58, %v128_v6 }
0x1412   :  { %844 = vrot.lane.b32.xlu0 %v835_v3, %s1248_s2  ;;  %v839_v10 = vmul.f32 0.5, %v835_v3 }
0x1413   :  { %v866_v9 = vmul.f32 0.5, %v865_v8 }
0x1415   :  { %1197 = vtanh.f32 %v866_v9 }
0x1416   :  { %1199 = vtanh.f32 %v839_v10 }
0x141f   :  { %v1198_v61 = vpop.eup %1197 }
0x1420   :  { %v1200_v62 = vpop.eup %1199  ;;  %v868_v63 = vmul.f32 0.5, %v1198_v61 }
0x1421   :  { %v841_v0 = vmul.f32 0.5, %v1200_v62 }
0x1422   :  { %v869_v7 = vadd.f32 0.5, %v868_v63 }
0x1423   :  { %v842_v12 = vadd.f32 0.5, %v841_v0 }
0x1483   :  { %v872_v11 = vpop.permute.xlu1 %871 }
0x1484   :  { %v874_v13 = vmul.f32 %v872_v11, %v869_v7  ;;  %v845_v14 = vpop.permute.xlu0 %844 }
0x1485   :  { %v847_v15 = vmul.f32 %v845_v14, %v842_v12 }
0x1486   :  { %876 = vrot.lane.b32.xlu1 %v874_v13, %s1246_s19 }
0x1487   :  { %849 = vrot.lane.b32.xlu0 %v847_v15, %s1246_s19 }
0x14f8   :  { %v877_v17 = vpop.permute.xlu1 %876 }
0x14f9   :  { %v879_v18 = vadd.f32 %v877_v17, %v128_v6  ;;  %v850_v19 = vpop.permute.xlu0 %849 }
0x14fa   :  { %v852_v20 = vadd.f32 %v850_v19, %v835_v3 }
0x14fb   :  { %1201 = vtanh.f32 %v879_v18 }
0x14fc   :  { %1203 = vtanh.f32 %v852_v20 }
0x1505   :  { %v1202_v21 = vpop.eup %1201 }
0x1506   :  { %v1204_v23 = vpop.eup %1203  ;;  %v881_v24 = vsub.f32 %v784_v49, %v1202_v21 }
0x1507   :  { %v854_v26 = vsub.f32 %v757_v51, %v1204_v23 }
0x1508   :  { %883 = vrot.lane.b32.xlu1 %v881_v24, %s1247_s1 }
0x1509   :  { %856 = vrot.lane.b32.xlu0 %v854_v26, %s1247_s1 }
0x157a   :  { %v884_v27 = vpop.permute.xlu1 %883 }
0x157b   :  { %v886_v28 = vmul.f32 %v884_v27, %v869_v7  ;;  %v857_v29 = vpop.permute.xlu0 %856 }
0x157c   :  { %v859_v30 = vmul.f32 %v857_v29, %v842_v12 }
0x157d   :  { %888 = vrot.lane.b32.xlu1 %v886_v28, %s1248_s2 }
0x157e   :  { %861 = vrot.lane.b32.xlu0 %v859_v30, %s1248_s2 }
0x15ef   :  { %v889_v31 = vpop.permute.xlu1 %888 }
0x15f0   :  { %v891_v32 = vadd.f32 %v1202_v21, %v889_v31  ;;  %v862_v33 = vpop.permute.xlu0 %861 }
0x15f1   :  { %v864_v2 = vadd.f32 %v1204_v23, %v862_v33 }
0x15f2   :  { %893 = vrot.lane.b32.xlu0 %v891_v32, %s1246_s19 }
0x15f3   :  { %897 = vrot.lane.b32.xlu1 %v864_v2, %s1247_s1 }
0x15f6   :  { %98 = vperm.xlu0 %1139, %v59_v34  }
0x1664   :  { %v894_v35 = vpop.permute.xlu0 %893 }
0x1665   :  { %v898_v36 = vpop.permute.xlu1 %897 }
0x1666   :  { %v900_v37 = vsel %vm257_vm0, %v894_v35, %v898_v36 }
0x1667   :  { %v901_v38 = vpack.c.bf16 %v900_v37, %v900_v37 }
0x1669   :  { %1127 = vmatmul.mubr.msk.bf16.vlgmr.msra.gmra.mrb[12].mxu1 %vm182_vm1, %v901_v38 }
0x1675   :  { %v99_v45 = vpop.permute.xlu0 %98 }
0x1676   :  { %v114_v46 = vmul.f32 %v1364_v22, %v99_v45 }
0x1678   :  { %v129_v48 = vadd.f32 %v1370_v25, %v114_v46 }
0x173c   :  { %v939_v39 = vpop.f32.mrb[12].mxu1 }
0x173d   :  { %v940_v40 = vadd.f32 %v939_v39, %v1357_v16  ;;  %v941_v41 = vpop.f32.mrb[13].mxu1 }
0x173e   :  { %v942_v42 = vadd.f32 %v941_v41, %v1391_v47  ;;  %v943_v43 = vpop.f32.mrb[14].mxu1  ;;  %v1130_v41 = vld [vmem:[#allocation2] ss:$0 sm:$0xff] }
0x173f   :  { %v944_v44 = vpop.f32.mrb[15].mxu1  ;;  %978 = vrot.lane.b32.xlu0 %v940_v40, %s1246_s19  ;;  %v972_v49 = vadd.f32 %v940_v40, %v129_v48 }
0x1740   :  { %951 = vrot.lane.b32.xlu1 %v942_v42, %s1248_s2  ;;  %v946_v51 = vmul.f32 0.5, %v942_v42 }
0x1741   :  { %v973_v50 = vmul.f32 0.5, %v972_v49 }
0x1743   :  { %1205 = vtanh.f32 %v973_v50 }
0x1744   :  { %1207 = vtanh.f32 %v946_v51 }
0x174d   :  { %v1206_v16 = vpop.eup %1205 }
0x174e   :  { %v1208_v52 = vpop.eup %1207  ;;  %v975_v53 = vmul.f32 0.5, %v1206_v16 }
0x174f   :  { %v948_v54 = vmul.f32 0.5, %v1208_v52 }
0x1750   :  { %v976_v55 = vadd.f32 0.5, %v975_v53 }
0x1751   :  { %v949_v57 = vadd.f32 0.5, %v948_v54 }
0x17b1   :  { %v979_v56 = vpop.permute.xlu0 %978 }
0x17b2   :  { %v981_v58 = vmul.f32 %v979_v56, %v976_v55  ;;  %v952_v59 = vpop.permute.xlu1 %951 }
0x17b3   :  { %v954_v3 = vmul.f32 %v952_v59, %v949_v57 }
0x17b4   :  { %983 = vrot.lane.b32.xlu0 %v981_v58, %s1246_s19 }
0x17b5   :  { %956 = vrot.lane.b32.xlu1 %v954_v3, %s1246_s19 }
0x1826   :  { %v984_v22 = vpop.permute.xlu0 %983 }
0x1827   :  { %v986_v25 = vadd.f32 %v984_v22, %v129_v48  ;;  %v957_v60 = vpop.permute.xlu1 %956 }
0x1828   :  { %v959_v1 = vadd.f32 %v957_v60, %v942_v42 }
0x1829   :  { %1209 = vtanh.f32 %v986_v25 }
0x182a   :  { %1211 = vtanh.f32 %v959_v1 }
0x1833   :  { %v1210_v4 = vpop.eup %1209 }
0x1834   :  { %v1212_v5 = vpop.eup %1211  ;;  %v988_v6 = vsub.f32 %v891_v32, %v1210_v4 }
0x1835   :  { %v961_v8 = vsub.f32 %v864_v2, %v1212_v5 }
0x1836   :  { %990 = vrot.lane.b32.xlu0 %v988_v6, %s1247_s1 }
0x1837   :  { %963 = vrot.lane.b32.xlu1 %v961_v8, %s1247_s1 }
0x18a8   :  { %v991_v9 = vpop.permute.xlu0 %990 }
0x18a9   :  { %v993_v10 = vmul.f32 %v991_v9, %v976_v55  ;;  %v964_v61 = vpop.permute.xlu1 %963 }
0x18aa   :  { %v966_v62 = vmul.f32 %v964_v61, %v949_v57 }
0x18ab   :  { %995 = vrot.lane.b32.xlu0 %v993_v10, %s1248_s2 }
0x18ac   :  { %968 = vrot.lane.b32.xlu1 %v966_v62, %s1248_s2 }
0x191d   :  { %v996_v63 = vpop.permute.xlu0 %995 }
0x191e   :  { %v998_v0 = vadd.f32 %v1210_v4, %v996_v63  ;;  %v969_v7 = vpop.permute.xlu1 %968 }
0x191f   :  { %v971_v11 = vadd.f32 %v1212_v5, %v969_v7 }
0x1920   :  { %1000 = vrot.lane.b32.xlu1 %v998_v0, %s1246_s19 }
0x1921   :  { %1004 = vrot.lane.b32.xlu0 %v971_v11, %s1247_s1 }
0x1992   :  { %v1001_v12 = vpop.permute.xlu1 %1000 }
0x1993   :  { %v1005_v13 = vpop.permute.xlu0 %1004 }
0x1994   :  { %v1007_v14 = vsel %vm257_vm0, %v1001_v12, %v1005_v13 }
0x1995   :  { %v1008_v15 = vpack.c.bf16 %v1007_v14, %v1007_v14 }
0x1997   :  { %1128 = vmatmul.mubr.msk.bf16.vlgmr.msra.gmra.mrb[16].mxu0 %vm182_vm1, %v1008_v15 }
0x1a6a   :  { %v1046_v17 = vpop.f32.mrb[16].mxu0 }
0x1a6b   :  { %v1047_v18 = vpop.f32.mrb[17].mxu0 }
0x1a6c   :  { %v1048_v19 = vadd.f32 %v1047_v18, %v1391_v47  ;;  %v1049_v20 = vpop.f32.mrb[18].mxu0  ;;  %v1129_v47 = vld [vmem:[%s1584_s5] ss:$0 sm:$0xff] }
0x1a6d   :  { %v1050_v21 = vpop.f32.mrb[19].mxu0 }
0x1a6e   :  { %1057 = vrot.lane.b32.xlu1 %v1048_v19, %s1248_s2  ;;  %v1052_v23 = vmul.f32 0.5, %v1048_v19 }
0x1a70   :  { %1213 = vtanh.f32 %v1052_v23 }
0x1a7a   :  { %v1214_v24 = vpop.eup %1213 }
0x1a7b   :  { %v1054_v26 = vmul.f32 0.5, %v1214_v24 }
0x1a7d   :  { %v1055_v27 = vadd.f32 0.5, %v1054_v26 }
0x1ae0   :  { %v1058_v28 = vpop.permute.xlu1 %1057 }
0x1ae1   :  { %v1060_v29 = vmul.f32 %v1058_v28, %v1055_v27 }
0x1ae3   :  { %1062 = vrot.lane.b32.xlu0 %v1060_v29, %s1246_s19 }
0x1b55   :  { %v1063_v30 = vpop.permute.xlu0 %1062 }
0x1b56   :  { %v1065_v31 = vadd.f32 %v1063_v30, %v1048_v19 }
0x1b58   :  { %1215 = vtanh.f32 %v1065_v31 }
0x1b62   :  { %v1216_v32 = vpop.eup %1215 }
0x1b63   :  { %v1067_v33 = vsub.f32 %v971_v11, %v1216_v32 }
0x1b65   :  { %1069 = vrot.lane.b32.xlu1 %v1067_v33, %s1247_s1 }
0x1b69   :  { %1084 = vrot.lane.b32.xlu1 %v1129_v47, %s1246_s19 }
0x1bd7   :  { %v1070_v2 = vpop.permute.xlu1 %1069 }
0x1bd8   :  { %v1072_v34 = vmul.f32 %v1070_v2, %v1055_v27 }
0x1bda   :  { %1074 = vrot.lane.b32.xlu0 %v1072_v34, %s1248_s2 }
0x1bdb   :  { %v1085_v36 = vpop.permute.xlu1 %1084 }
0x1c4c   :  { %v1075_v35 = vpop.permute.xlu0 %1074 }
0x1c4d   :  { %v1077_v37 = vadd.f32 %v1216_v32, %v1075_v35 }
0x1c4f   :  { %v1087_v38 = vmul.f32 %v1085_v36, %v1077_v37 }
0x1c51   :  { %1089 = vrot.lane.b32.xlu0 %v1087_v38, %s1246_s19 }
0x1cc3   :  { %v1090_v39 = vpop.permute.xlu0 %1089 }
0x1cc4   :  { %v1093_v40 = vsel %vm1092_vm2, %v1090_v39, 0.0 }
0x1cc5   :  { %1094 = vadd.xlane.f32.xlu1 %v1093_v40 }
0x1d52   :  { %v1095_v42 = vpop.xlane.xlu1 %1094 }
0x1d53   :  { %v1103_v43 = vadd.f32 %v1130_v41, %v1095_v42 }
0x1d55   :  { %1105 = vst.msk [vmem:[%s1586_s7] sm:$0x3] %vm1104_vm3, %v1103_v43 }
0x1d56   :  { %1110 = vsyncpa [#allocation4], 1 }

</bundles_post_ra>
